<compile_context>
chip_gen: v6e
topology: v6e:2x2x1
jax: 0.10.0
libtpu: 0.0.40
codegen_flags: <defaults>
</compile_context>

<pallas_src>
import math
import functools

import jax
import jax.numpy as jnp
from jax import lax
from jax.experimental import pallas as pl
from jax.experimental.pallas import tpu as pltpu


def _vmem_budget_bytes():
    """Generation-aware scoped-VMEM budget (~45% of physical VMEM)."""
    try:
        info = pltpu.get_tpu_info()
        cap = int(getattr(info, "vmem_capacity_bytes", 0)) or (64 * 1024 * 1024)
    except Exception:
        cap = 64 * 1024 * 1024  # conservative (v7x physical)
    return max(16 * 1024 * 1024, min(int(cap * 0.45), 100 * 1024 * 1024))


def _pick_m_tile(m, d, budget):
    """Largest M-tile dividing m whose double-buffered working set fits the budget."""
    weights = 2 * (3 * d * d * 2 + 3 * d * 2)  # bf16 QKV weights + biases, 2 buffers
    for cand in (1024, 512, 256, 128, 64, 32, 16, 8):
        if m % cand:
            continue
        per_tile = 2 * (3 * cand * d * 4 + 3 * cand * d * 2)  # 3 f32 ins + 3 bf16 outs
        if weights + per_tile <= budget:
            return cand
    return m  # full extent fallback (always a legal block shape)


def _pick_q_tile(seq, d, budget):
    """Largest query tile dividing seq whose attention working set fits the budget."""
    kv = 2 * 2 * (seq * d * 2)          # K and V blocks, bf16, double buffered
    wo = 2 * (d * d * 2 + d * 2)        # resident W_o + b_o, bf16, double buffered
    for cand in (512, 256, 128, 64, 32, 16, 8):
        if seq % cand:
            continue
        q_out = 2 * (cand * d * 2 + cand * d * 4)  # Q block bf16 + out block f32
        scratch = cand * d * 2                     # combined-heads bf16 scratch
        temps = 4 * cand * seq * 4                 # (tq, S) f32 temporaries headroom
        if kv + wo + q_out + scratch + temps <= budget:
            return cand
    return seq  # full extent fallback


# ----------------------------------------------------------------------------
# Kernel 1: fused Q/K/V projection   out_p = x_p @ W_p + b_p   for p in {q,k,v}
#   (1/sqrt(d_k) is already folded into W_q / b_q by the wrapper)
# ----------------------------------------------------------------------------
def _qkv_proj_kernel(xq_ref, xk_ref, xv_ref, w_ref, b_ref, q_out, k_out, v_out):
    # w_ref: (3, D, D) bf16   b_ref: (3, 1, D) bf16   outputs: (tm, D) bf16
    for p, (x_ref, o_ref) in enumerate(((xq_ref, q_out), (xk_ref, k_out), (xv_ref, v_out))):
        x = x_ref[...].astype(jnp.bfloat16)                       # (tm, D)
        acc = jnp.dot(x, w_ref[p], preferred_element_type=jnp.float32)  # MXU, f32 acc
        o_ref[...] = (acc + b_ref[p]).astype(jnp.bfloat16)        # lane-dense bf16 store


def fused_qkv_projection(q2d, k2d, v2d, w_qkv, b_qkv, *, budget):
    """q2d/k2d/v2d: (M, D) f32; w_qkv: (3, D, D) bf16; b_qkv: (3, 1, D) bf16
    -> (q, k, v) each (M, D) bf16."""
    M, D = q2d.shape
    tm = _pick_m_tile(M, D, budget)
    x_spec = pl.BlockSpec((tm, D), lambda i: (i, 0))
    o_spec = pl.BlockSpec((tm, D), lambda i: (i, 0))
    out_sds = jax.ShapeDtypeStruct((M, D), jnp.bfloat16)
    return pl.pallas_call(
        _qkv_proj_kernel,
        out_shape=(out_sds, out_sds, out_sds),
        grid=(M // tm,),
        in_specs=[
            x_spec, x_spec, x_spec,
            # constant index_map => weights DMA'd once and stay VMEM-resident
            pl.BlockSpec((3, D, D), lambda i: (0, 0, 0)),
            pl.BlockSpec((3, 1, D), lambda i: (0, 0, 0)),
        ],
        out_specs=[o_spec, o_spec, o_spec],
        compiler_params=pltpu.CompilerParams(
            dimension_semantics=("parallel",),
            vmem_limit_bytes=budget,
        ),
    )(q2d, k2d, v2d, w_qkv, b_qkv)


# ----------------------------------------------------------------------------
# Kernel 2: attention for one (batch, query-tile) + fused full output projection
# ----------------------------------------------------------------------------
def _attn_kernel(q_ref, k_ref, v_ref, wo_ref, bo_ref, o_ref, comb_ref, *, num_heads):
    # q_ref: (tq, D) bf16 (pre-scaled)   k_ref/v_ref: (S, D) bf16
    # wo_ref: (D, D) bf16   bo_ref: (1, D) bf16   o_ref: (1, tq, D) f32
    # comb_ref: (tq, D) bf16 VMEM scratch holding the combined heads
    D = q_ref.shape[1]
    dk = D // num_heads

    # Hoisted full-width loads (already bf16; no per-head casting / scaling).
    q = q_ref[...]
    k = k_ref[...]
    v = v_ref[...]

    # TODO(synk): dk=64 lane slices are 64-lane aligned only for even heads; for very
    # large S consider head-pair (128-lane) slicing or a (B, H) grid axis instead of
    # this static unroll.
    for h in range(num_heads):
        lo = h * dk
        qh = q[:, lo:lo + dk]
        kh = k[:, lo:lo + dk]
        vh = v[:, lo:lo + dk]

        # QK^T: contract last dims directly (no materialized k.T / XLU transpose).
        scores = lax.dot_general(
            qh, kh, dimension_numbers=(((1,), (1,)), ((), ())),
            preferred_element_type=jnp.float32)                 # (tq, S) f32

        m = jnp.max(scores, axis=-1, keepdims=True)
        e = jnp.exp(scores - m)
        denom = jnp.sum(e, axis=-1, keepdims=True)
        probs = (e * pl.reciprocal(denom, approx=True)).astype(jnp.bfloat16)

        head_out = jnp.dot(probs, vh, preferred_element_type=jnp.float32)  # (tq, dk)
        comb_ref[:, lo:lo + dk] = head_out.astype(jnp.bfloat16)  # park in VMEM scratch

    # Single full-K output projection (K = D) at full MXU fill, then bias.
    out = jnp.dot(comb_ref[...], wo_ref[...], preferred_element_type=jnp.float32)
    o_ref[0] = out + bo_ref[...]                                 # lane-dense f32 store


def attention_with_output_projection(qp, kp, vp, w_o, b_o, *, batch, seq, num_heads,
                                     budget):
    """qp/kp/vp: (B*S, D) bf16 -> (B, S, D) f32 = softmax(QK^T)V @ W_o + b_o."""
    M, D = qp.shape
    tq = _pick_q_tile(seq, D, budget)
    n_q = seq // tq if seq % tq == 0 else 1
    if n_q == 1:
        tq = seq
    kern = functools.partial(_attn_kernel, num_heads=num_heads)
    return pl.pallas_call(
        kern,
        out_shape=jax.ShapeDtypeStruct((batch, seq, D), jnp.float32),
        grid=(batch, n_q),
        in_specs=[
            pl.BlockSpec((tq, D), lambda b, qi: (b * n_q + qi, 0)),   # Q query tile
            pl.BlockSpec((seq, D), lambda b, qi: (b, 0)),             # K full-seq/batch
            pl.BlockSpec((seq, D), lambda b, qi: (b, 0)),             # V full-seq/batch
            pl.BlockSpec((D, D), lambda b, qi: (0, 0)),               # W_o resident
            pl.BlockSpec((1, D), lambda b, qi: (0, 0)),               # b_o resident
        ],
        out_specs=pl.BlockSpec((1, tq, D), lambda b, qi: (b, qi, 0)),
        scratch_shapes=[pltpu.VMEM((tq, D), jnp.bfloat16)],           # combined heads
        compiler_params=pltpu.CompilerParams(
            dimension_semantics=("parallel", "parallel"),  # v7x: 2 TCs share B*n_q steps
            vmem_limit_bytes=budget,
        ),
    )(qp, kp, vp, w_o, b_o)


# ----------------------------------------------------------------------------
# MultiHeadAttention forward (matches the PyTorch module with mask=None)
# ----------------------------------------------------------------------------
def multi_head_attention(params, Q, K, V, num_heads):
    B, S, D = Q.shape
    assert D % num_heads == 0
    # NOTE: B > 1 requires S % 8 == 0 (sublane tiling of the per-batch K/V block);
    # B == 1 is always legal because every block is then full-extent.
    assert S % 8 == 0 or B == 1, "seq length must be a multiple of 8 when batch > 1"
    M = B * S
    budget = _vmem_budget_bytes()
    scale = 1.0 / math.sqrt(D // num_heads)

    # Trace-time glue: fold 1/sqrt(d_k) into the Q projection, stack, pre-cast to bf16.
    w_qkv = jnp.stack([params["w_q"] * scale, params["w_k"], params["w_v"]]
                      ).astype(jnp.bfloat16)                                    # (3, D, D)
    b_qkv = jnp.stack([params["b_q"] * scale, params["b_k"], params["b_v"]]
                      )[:, None, :].astype(jnp.bfloat16)                        # (3, 1, D)
    w_o = params["w_o"].astype(jnp.bfloat16)                                    # (D, D)
    b_o = params["b_o"].reshape(1, D).astype(jnp.bfloat16)                      # (1, D)

    qp, kp, vp = fused_qkv_projection(
        Q.reshape(M, D), K.reshape(M, D), V.reshape(M, D), w_qkv, b_qkv,
        budget=budget)                                                          # 3x (M, D) bf16

    out = attention_with_output_projection(
        qp, kp, vp, w_o, b_o, batch=B, seq=S, num_heads=num_heads, budget=budget)
    return out                                                                  # (B, S, D) f32


# ----------------------------------------------------------------------------
# Pure-JAX f32 reference (same math) for correctness verification
# ----------------------------------------------------------------------------
def reference_mha(params, Q, K, V, num_heads):
    B, S, D = Q.shape
    d_k = D // num_heads

    def proj(x, w, b):
        return x @ w + b

    def split(x):
        return x.reshape(B, S, num_heads, d_k).transpose(0, 2, 1, 3)

    q = split(proj(Q, params["w_q"], params["b_q"]))
    k = split(proj(K, params["w_k"], params["b_k"]))
    v = split(proj(V, params["w_v"], params["b_v"]))
    scores = jnp.einsum("bhqd,bhkd->bhqk", q, k) / math.sqrt(d_k)
    probs = jax.nn.softmax(scores, axis=-1)
    attn = jnp.einsum("bhqk,bhkd->bhqd", probs, v)
    combined = attn.transpose(0, 2, 1, 3).reshape(B, S, D)
    return proj(combined, params["w_o"], params["b_o"])


# ----------------------------------------------------------------------------
# Deterministic parameter init (mimics nn.Linear uniform(-1/sqrt(fan_in), +))
# ----------------------------------------------------------------------------
def init_params(key, d_model):
    bound = 1.0 / math.sqrt(d_model)
    keys = jax.random.split(key, 8)
    names = ["w_q", "b_q", "w_k", "b_k", "w_v", "b_v", "w_o", "b_o"]
    params = {}
    for i, name in enumerate(names):
        shape = (d_model, d_model) if name.startswith("w") else (d_model,)
        params[name] = jax.random.uniform(
            keys[i], shape, jnp.float32, minval=-bound, maxval=bound
        )
    return params


if __name__ == "__main__":
    d_model = 512
    num_heads = 8
    batch = 2
    seq = 8

    root = jax.random.PRNGKey(0)
    k_param, k_q, k_k, k_v = jax.random.split(root, 4)
    params = init_params(k_param, d_model)

    Q = jax.random.normal(k_q, (batch, seq, d_model), jnp.float32)
    K = jax.random.normal(k_k, (batch, seq, d_model), jnp.float32)
    V = jax.random.normal(k_v, (batch, seq, d_model), jnp.float32)

    out = multi_head_attention(params, Q, K, V, num_heads)
    out = jax.block_until_ready(out)

    ref = reference_mha(params, Q, K, V, num_heads)
    assert out.shape == (batch, seq, d_model)
    # bf16 MXU operands + bf16 intermediates + approx reciprocal -> loosened tolerance.
    max_err = float(jnp.max(jnp.abs(out - ref)))
    assert max_err < 5e-2, f"Pallas output mismatch (max abs err={max_err})"

    print("KERNEL_OK")
</pallas_src>

<mosaic_0001>
module attributes {stable_mosaic.version = 11 : i64} {
  func.func @_qkv_proj_kernel(%arg0: i32, %arg1: memref<16x512xf32, #tpu.memory_space<vmem>>, %arg2: memref<16x512xf32, #tpu.memory_space<vmem>>, %arg3: memref<16x512xf32, #tpu.memory_space<vmem>>, %arg4: memref<3x512x512xbf16, #tpu.memory_space<vmem>>, %arg5: memref<3x1x512xbf16, #tpu.memory_space<vmem>>, %arg6: memref<16x512xbf16, #tpu.memory_space<vmem>>, %arg7: memref<16x512xbf16, #tpu.memory_space<vmem>>, %arg8: memref<16x512xbf16, #tpu.memory_space<vmem>>) attributes {dimension_semantics = [#tpu.dimension_semantics<parallel>], iteration_bounds = array<i64: 1>, scalar_prefetch = 0 : i64, scratch_operands = 0 : i64, tpu.core_type = #tpu.core_type<tc>, window_params = [{transform_indices = @transform_0, window_bounds = array<i64: 16, 512>}, {transform_indices = @transform_1, window_bounds = array<i64: 16, 512>}, {transform_indices = @transform_2, window_bounds = array<i64: 16, 512>}, {pipeline_mode = #tpu.pipeline_mode<synchronous>, transform_indices = @transform_3, window_bounds = array<i64: 3, 512, 512>}, {pipeline_mode = #tpu.pipeline_mode<synchronous>, transform_indices = @transform_4, window_bounds = array<i64: 3, 1, 512>}, {transform_indices = @transform_5, window_bounds = array<i64: 16, 512>}, {transform_indices = @transform_6, window_bounds = array<i64: 16, 512>}, {transform_indices = @transform_7, window_bounds = array<i64: 16, 512>}]} {
    %c0 = arith.constant 0 : index
    %c0_0 = arith.constant 0 : index
    %0 = vector.load %arg1[%c0, %c0_0] : memref<16x512xf32, #tpu.memory_space<vmem>>, vector<16x512xf32>
    %1 = arith.truncf %0 : vector<16x512xf32> to vector<16x512xbf16>
    %c0_1 = arith.constant 0 : index
    %c0_2 = arith.constant 0 : index
    %c0_3 = arith.constant 0 : index
    %2 = vector.load %arg4[%c0_1, %c0_2, %c0_3] : memref<3x512x512xbf16, #tpu.memory_space<vmem>>, vector<1x512x512xbf16>
    %3 = vector.shape_cast %2 : vector<1x512x512xbf16> to vector<512x512xbf16>
    %cst = arith.constant dense<0.000000e+00> : vector<16x512xf32>
    %4 = tpu.matmul %1, %3, %cst {dimension_numbers = #tpu.dot_dimension_numbers<[1], [0], [0], [1], [0, 0, 1, 1], [], []>} : vector<16x512xbf16>, vector<512x512xbf16>, vector<16x512xf32> -> vector<16x512xf32>
    %c0_4 = arith.constant 0 : index
    %c0_5 = arith.constant 0 : index
    %c0_6 = arith.constant 0 : index
    %5 = vector.load %arg5[%c0_4, %c0_5, %c0_6] : memref<3x1x512xbf16, #tpu.memory_space<vmem>>, vector<1x1x512xbf16>
    %6 = vector.shape_cast %5 : vector<1x1x512xbf16> to vector<1x512xbf16>
    %7 = arith.extf %6 : vector<1x512xbf16> to vector<1x512xf32>
    %8 = vector.broadcast %7 : vector<1x512xf32> to vector<16x512xf32>
    %9 = arith.addf %4, %8 : vector<16x512xf32>
    %10 = arith.truncf %9 : vector<16x512xf32> to vector<16x512xbf16>
    %c0_7 = arith.constant 0 : index
    %c0_8 = arith.constant 0 : index
    %11 = vector.load %arg6[%c0_7, %c0_8] : memref<16x512xbf16, #tpu.memory_space<vmem>>, vector<16x512xbf16>
    tpu.vector_store %arg6[%c0_7, %c0_8], %10 {strides = array<i32>} : memref<16x512xbf16, #tpu.memory_space<vmem>>, vector<16x512xbf16>,
    %c0_9 = arith.constant 0 : index
    %c0_10 = arith.constant 0 : index
    %12 = vector.load %arg2[%c0_9, %c0_10] : memref<16x512xf32, #tpu.memory_space<vmem>>, vector<16x512xf32>
    %13 = arith.truncf %12 : vector<16x512xf32> to vector<16x512xbf16>
    %c1 = arith.constant 1 : index
    %c0_11 = arith.constant 0 : index
    %c0_12 = arith.constant 0 : index
    %14 = vector.load %arg4[%c1, %c0_11, %c0_12] : memref<3x512x512xbf16, #tpu.memory_space<vmem>>, vector<1x512x512xbf16>
    %15 = vector.shape_cast %14 : vector<1x512x512xbf16> to vector<512x512xbf16>
    %cst_13 = arith.constant dense<0.000000e+00> : vector<16x512xf32>
    %16 = tpu.matmul %13, %15, %cst_13 {dimension_numbers = #tpu.dot_dimension_numbers<[1], [0], [0], [1], [0, 0, 1, 1], [], []>} : vector<16x512xbf16>, vector<512x512xbf16>, vector<16x512xf32> -> vector<16x512xf32>
    %c1_14 = arith.constant 1 : index
    %c0_15 = arith.constant 0 : index
    %c0_16 = arith.constant 0 : index
    %17 = vector.load %arg5[%c1_14, %c0_15, %c0_16] : memref<3x1x512xbf16, #tpu.memory_space<vmem>>, vector<1x1x512xbf16>
    %18 = vector.shape_cast %17 : vector<1x1x512xbf16> to vector<1x512xbf16>
    %19 = arith.extf %18 : vector<1x512xbf16> to vector<1x512xf32>
    %20 = vector.broadcast %19 : vector<1x512xf32> to vector<16x512xf32>
    %21 = arith.addf %16, %20 : vector<16x512xf32>
    %22 = arith.truncf %21 : vector<16x512xf32> to vector<16x512xbf16>
    %c0_17 = arith.constant 0 : index
    %c0_18 = arith.constant 0 : index
    %23 = vector.load %arg7[%c0_17, %c0_18] : memref<16x512xbf16, #tpu.memory_space<vmem>>, vector<16x512xbf16>
    tpu.vector_store %arg7[%c0_17, %c0_18], %22 {strides = array<i32>} : memref<16x512xbf16, #tpu.memory_space<vmem>>, vector<16x512xbf16>,
    %c0_19 = arith.constant 0 : index
    %c0_20 = arith.constant 0 : index
    %24 = vector.load %arg3[%c0_19, %c0_20] : memref<16x512xf32, #tpu.memory_space<vmem>>, vector<16x512xf32>
    %25 = arith.truncf %24 : vector<16x512xf32> to vector<16x512xbf16>
    %c2 = arith.constant 2 : index
    %c0_21 = arith.constant 0 : index
    %c0_22 = arith.constant 0 : index
    %26 = vector.load %arg4[%c2, %c0_21, %c0_22] : memref<3x512x512xbf16, #tpu.memory_space<vmem>>, vector<1x512x512xbf16>
    %27 = vector.shape_cast %26 : vector<1x512x512xbf16> to vector<512x512xbf16>
    %cst_23 = arith.constant dense<0.000000e+00> : vector<16x512xf32>
    %28 = tpu.matmul %25, %27, %cst_23 {dimension_numbers = #tpu.dot_dimension_numbers<[1], [0], [0], [1], [0, 0, 1, 1], [], []>} : vector<16x512xbf16>, vector<512x512xbf16>, vector<16x512xf32> -> vector<16x512xf32>
    %c2_24 = arith.constant 2 : index
    %c0_25 = arith.constant 0 : index
    %c0_26 = arith.constant 0 : index
    %29 = vector.load %arg5[%c2_24, %c0_25, %c0_26] : memref<3x1x512xbf16, #tpu.memory_space<vmem>>, vector<1x1x512xbf16>
    %30 = vector.shape_cast %29 : vector<1x1x512xbf16> to vector<1x512xbf16>
    %31 = arith.extf %30 : vector<1x512xbf16> to vector<1x512xf32>
    %32 = vector.broadcast %31 : vector<1x512xf32> to vector<16x512xf32>
    %33 = arith.addf %28, %32 : vector<16x512xf32>
    %34 = arith.truncf %33 : vector<16x512xf32> to vector<16x512xbf16>
    %c0_27 = arith.constant 0 : index
    %c0_28 = arith.constant 0 : index
    %35 = vector.load %arg8[%c0_27, %c0_28] : memref<16x512xbf16, #tpu.memory_space<vmem>>, vector<16x512xbf16>
    tpu.vector_store %arg8[%c0_27, %c0_28], %34 {strides = array<i32>} : memref<16x512xbf16, #tpu.memory_space<vmem>>, vector<16x512xbf16>,
    return
  }
  func.func @transform_0(%arg0: i32) -> (i32, i32) {
    %c0_i32 = arith.constant 0 : i32
    %c0_i32_0 = arith.constant 0 : i32
    return %arg0, %c0_i32 : i32, i32
  }
  func.func @transform_1(%arg0: i32) -> (i32, i32) {
    %c0_i32 = arith.constant 0 : i32
    %c0_i32_0 = arith.constant 0 : i32
    return %arg0, %c0_i32 : i32, i32
  }
  func.func @transform_2(%arg0: i32) -> (i32, i32) {
    %c0_i32 = arith.constant 0 : i32
    %c0_i32_0 = arith.constant 0 : i32
    return %arg0, %c0_i32 : i32, i32
  }
  func.func @transform_3(%arg0: i32) -> (i32, i32, i32) {
    %c0_i32 = arith.constant 0 : i32
    %c0_i32_0 = arith.constant 0 : i32
    %c0_i32_1 = arith.constant 0 : i32
    %c0_i32_2 = arith.constant 0 : i32
    return %c0_i32, %c0_i32_0, %c0_i32_1 : i32, i32, i32
  }
  func.func @transform_4(%arg0: i32) -> (i32, i32, i32) {
    %c0_i32 = arith.constant 0 : i32
    %c0_i32_0 = arith.constant 0 : i32
    %c0_i32_1 = arith.constant 0 : i32
    %c0_i32_2 = arith.constant 0 : i32
    return %c0_i32, %c0_i32_0, %c0_i32_1 : i32, i32, i32
  }
  func.func @transform_5(%arg0: i32) -> (i32, i32) {
    %c0_i32 = arith.constant 0 : i32
    %c0_i32_0 = arith.constant 0 : i32
    return %arg0, %c0_i32 : i32, i32
  }
  func.func @transform_6(%arg0: i32) -> (i32, i32) {
    %c0_i32 = arith.constant 0 : i32
    %c0_i32_0 = arith.constant 0 : i32
    return %arg0, %c0_i32 : i32, i32
  }
  func.func @transform_7(%arg0: i32) -> (i32, i32) {
    %c0_i32 = arith.constant 0 : i32
    %c0_i32_0 = arith.constant 0 : i32
    return %arg0, %c0_i32 : i32, i32
  }
}

</mosaic_0001>

<bundles_post_ra>
// kernel: tpu_custom_call.1
= control target key start
LH: loop header
LB: loop body
LE: loop exit
PB: predicated region body
PF: predicated region fallthrough
CT: control target
= control target key end

     0   :  { %13 = vsyncpa [#allocation3], 0  ;;  %s4516_s0 = inlined_call_operand.hbm [shape: f32[16,512], index: 0, kind: input, shape index: {}]   ;;  %s4517_s1 = inlined_call_operand.hbm [shape: f32[16,512], index: 1, kind: input, shape index: {}]   ;;  %s4518_s2 = inlined_call_operand.hbm [shape: f32[16,512], index: 2, kind: input, shape index: {}]   ;;  %s4519_s3 = inlined_call_operand.hbm [shape: bf16[3,512,512], index: 3, kind: input, shape index: {}]   ;;  %s4520_s4 = inlined_call_operand.vmem [shape: bf16[3,1,512], index: 4, kind: input, shape index: {}]   ;;  %s4521_s5 = inlined_call_operand.hbm [shape: bf16[16,512], index: 5, kind: output, shape index: {0}]   ;;  %s4522_s6 = inlined_call_operand.hbm [shape: bf16[16,512], index: 6, kind: output, shape index: {1}]   ;;  %s4523_s7 = inlined_call_operand.hbm [shape: bf16[16,512], index: 7, kind: output, shape index: {2}]  }
   0x1   :  { %14 = vsyncpa [#allocation6], 0 }
   0x2   :  { %15 = vsyncpa [#allocation9], 0 }
   0x3   :  { %16 = vsyncpa [#allocation4], 0 }
   0x4   :  { %17 = vsyncpa [#allocation12], 0  ;;  %s4338_s24 = smov [#allocation5]   ;;  %s4339_s26 = smov [#allocation2]  }
   0x5   :  { %s35_s25 = sshll.u32 %s4338_s24, 4  ;;  %s23_s27 = sshll.u32 %s4339_s26, 4  ;;  %s36_s25 = int_to_ptr.vmem [resolvable:$true] %s35_s25  ;;  %s24_s27 = int_to_ptr.vmem [resolvable:$true] %s23_s27 }
   0x6   :  { %s4196_s28 = scalar_lea.vmem %s36_s25, 1024  ;;  %p4201_p1 = scmp.lt.s32.totalorder %s36_s25, %s36_s25 }
   0x7   :  { %p4197_p0 = scmp.ne.s32.totalorder %s36_s25, %s4196_s28  ;;  %p4202_p2 = scmp.lt.s32.totalorder %s4196_s28, %s4196_s28 }
   0x9   :  { %p4203_p3 = por %p4202_p2, %p4201_p1 }
   0xb   :  { %p4204_p4 = pnand %p4203_p3, %p4197_p0 }
   0xd   :  { %4207 = shalt.err (!%p4204_p4)
}
   0xe   :  { %s4340_s29 = smov 512   ;;  %s4341_s30 = smov 32  }
   0xf   :  { %41 = dma.hbm_to_vmem [thread:$0]  %s4517_s1, 1024, %s36_s25, [#allocation6], %s4340_s29, %s4340_s29, %s4341_s30  }
  0x10   :  { %s4216_s10 = scalar_lea.vmem %s24_s27, 1024  ;;  %p4221_p6 = scmp.lt.s32.totalorder %s24_s27, %s24_s27 }
  0x11   :  { %p4217_p5 = scmp.ne.s32.totalorder %s24_s27, %s4216_s10  ;;  %p4222_p7 = scmp.lt.s32.totalorder %s4216_s10, %s4216_s10 }
  0x13   :  { %p4223_p8 = por %p4222_p7, %p4221_p6 }
  0x15   :  { %p4224_p9 = pnand %p4223_p8, %p4217_p5 }
  0x17   :  { %4227 = shalt.err (!%p4224_p9)
}
  0x18   :  { %29 = dma.hbm_to_vmem [thread:$0]  %s4516_s0, 1024, %s24_s27, [#allocation3], %s4340_s29, %s4340_s29, %s4341_s30  }
  0x19   :  { %s4342_s13 = smov [#allocation7]   ;;  %s4343_s15 = smov [#allocation8]  }
  0x1a   :  { %s47_s14 = sshll.u32 %s4342_s13, 4  ;;  %s59_s16 = sshll.u32 %s4343_s15, 4  ;;  %s48_s14 = int_to_ptr.vmem [resolvable:$true] %s47_s14  ;;  %s60_s16 = int_to_ptr.vmem [resolvable:$true] %s59_s16 }
  0x1b   :  { %s4236_s17 = scalar_lea.vmem %s48_s14, 1024  ;;  %p4241_p11 = scmp.lt.s32.totalorder %s48_s14, %s48_s14 }
  0x1c   :  { %p4237_p10 = scmp.ne.s32.totalorder %s48_s14, %s4236_s17  ;;  %p4242_p12 = scmp.lt.s32.totalorder %s4236_s17, %s4236_s17 }
  0x1e   :  { %p4243_p13 = por %p4242_p12, %p4241_p11 }
  0x20   :  { %p4244_p0 = pnand %p4243_p13, %p4237_p10 }
  0x22   :  { %4247 = shalt.err (!%p4244_p0)
}
  0x23   :  { %53 = dma.hbm_to_vmem [thread:$0]  %s4518_s2, 1024, %s48_s14, [#allocation6], %s4340_s29, %s4340_s29, %s4341_s30  }
  0x24   :  { %s4256_s19 = scalar_lea.vmem %s60_s16, 49152  ;;  %p4261_p2 = scmp.lt.s32.totalorder %s60_s16, %s60_s16 }
  0x25   :  { %p4257_p1 = scmp.ne.s32.totalorder %s60_s16, %s4256_s19  ;;  %p4262_p3 = scmp.lt.s32.totalorder %s4256_s19, %s4256_s19 }
  0x27   :  { %p4263_p4 = por %p4262_p3, %p4261_p2 }
  0x29   :  { %p4264_p5 = pnand %p4263_p4, %p4257_p1 }
  0x2b   :  { %4267 = shalt.err (!%p4264_p5)
}
  0x2c   :  { %s4344_s0 = smov 256   ;;  %s4345_s20 = smov 16  }
  0x2d   :  { %65 = dma.hbm_to_vmem [thread:$0]  %s4519_s3, 49152, %s60_s16, [#allocation9], %s4344_s0, %s4344_s0, %s4345_s20  }
  0x2e   :  { %4328 = dma.done.wait [#allocation3], 1024  }
  0x2f   :  { %4329 = vsyncadd [#allocation3], 4294966272 }
  0x30   :  { %4330 = dma.done.wait [#allocation6], 2048  }
  0x31   :  { %4331 = vsyncadd [#allocation6], 4294965248 }
  0x32   :  { %4332 = dma.done.wait [#allocation9], 49152  }
  0x33   :  { %4333 = vsyncadd [#allocation9], 4294918144  ;;  %v3612_v0 = vld [vmem:[#allocation8 + $0xe4] ss:$16 sps:$4 sm:$0xff]   ;;  %v3616_v2 = vld [vmem:[#allocation8 + $0xe0] ss:$16 sps:$4 sm:$0xff]  }
  0x34   :  { %v3614_v1 = vld [vmem:[#allocation8 + $0x2e4] ss:$16 sps:$4 sm:$0xff]   ;;  %899 = vmatprep.subr.bf16.mxu0 %v3612_v0  ;;  %v3617_v3 = vld [vmem:[#allocation8 + $0x2e0] ss:$16 sps:$4 sm:$0xff]   ;;  %v81_v46 = vld [vmem:[#allocation2 + $0x8] sm:$0xff]  ;;  %s4347_s26 = smov [#allocation10]  }
  0x35   :  { %942 = vmatprep.subr.bf16.mxu1 %v3614_v1  ;;  %v3618_v4 = vld [vmem:[#allocation8 + $0xc4] ss:$16 sps:$4 sm:$0xff]   ;;  %900 = vmatpush1.bf16.msra.mxu0 %v3616_v2  ;;  %v3622_v6 = vld [vmem:[#allocation8 + $0xc0] ss:$16 sps:$4 sm:$0xff]   ;;  %v85_v47 = vld [vmem:[#allocation2 + $0x28] sm:$0xff]  ;;  %s3146_s27 = sshll.u32 %s4347_s26, 4  ;;  %s3147_s27 = int_to_ptr.vmem [resolvable:$true] %s3146_s27 }
  0x36   :  { %943 = vmatpush1.bf16.msra.mxu1 %v3617_v3  ;;  %v3620_v5 = vld [vmem:[#allocation8 + $0x2c4] ss:$16 sps:$4 sm:$0xff]   ;;  %901 = vmatprep.subr.bf16.mxu0 %v3618_v4  ;;  %v3623_v7 = vld [vmem:[#allocation8 + $0x2c0] ss:$16 sps:$4 sm:$0xff]   ;;  %v83_v48 = vld [vmem:[#allocation2 + $0x18] sm:$0xff]  ;;  %v89_v53 = vpack.c.bf16 %v85_v47, %v81_v46 }
  0x37   :  { %944 = vmatprep.subr.bf16.mxu1 %v3620_v5  ;;  %v3624_v8 = vld [vmem:[#allocation8 + $0xa4] ss:$16 sps:$4 sm:$0xff]   ;;  %v3628_v10 = vld [vmem:[#allocation8 + $0xa0] ss:$16 sps:$4 sm:$0xff]   ;;  %v87_v49 = vld [vmem:[#allocation2 + $0x38] sm:$0xff] }
  0x38   :  { %v3626_v9 = vld [vmem:[#allocation8 + $0x2a4] ss:$16 sps:$4 sm:$0xff]   ;;  %v3629_v11 = vld [vmem:[#allocation8 + $0x2a0] ss:$16 sps:$4 sm:$0xff]   ;;  %v91_v54 = vpack.c.bf16 %v87_v49, %v83_v48  ;;  %931 = vmatprep.mubr.bf16.mxu0 %v89_v53  ;;  %v3756_v46 = vld [vmem:[#allocation8 + $0x1e8] ss:$16 sps:$4 sm:$0xff]  }
  0x39   :  { %902 = vmatpush1.bf16.msra.mxu0 %v3622_v6  ;;  %v3630_v12 = vld [vmem:[#allocation8 + $0x84] ss:$16 sps:$4 sm:$0xff]   ;;  %v3634_v14 = vld [vmem:[#allocation8 + $0x80] ss:$16 sps:$4 sm:$0xff]   ;;  %v3759_v47 = vld [vmem:[#allocation8 + $0x3e8] ss:$16 sps:$4 sm:$0xff]  }
  0x3a   :  { %945 = vmatpush1.bf16.msra.mxu1 %v3623_v7  ;;  %903 = vmatprep.subr.bf16.mxu0 %v3624_v8  ;;  %v3632_v13 = vld [vmem:[#allocation8 + $0x284] ss:$16 sps:$4 sm:$0xff]   ;;  %v3635_v15 = vld [vmem:[#allocation8 + $0x280] ss:$16 sps:$4 sm:$0xff]   ;;  %v3764_v48 = vld [vmem:[#allocation8 + $0x1cc] ss:$16 sps:$4 sm:$0xff]  }
  0x3b   :  { %946 = vmatprep.subr.bf16.mxu1 %v3626_v9  ;;  %v3636_v16 = vld [vmem:[#allocation8 + $0x64] ss:$16 sps:$4 sm:$0xff]   ;;  %v3640_v18 = vld [vmem:[#allocation8 + $0x60] ss:$16 sps:$4 sm:$0xff]   ;;  %974 = vmatprep.mubr.bf16.mxu1 %v91_v54  ;;  %v3767_v49 = vld [vmem:[#allocation8 + $0x3cc] ss:$16 sps:$4 sm:$0xff]  }
  0x3c   :  { %v3638_v17 = vld [vmem:[#allocation8 + $0x264] ss:$16 sps:$4 sm:$0xff]   ;;  %v3641_v19 = vld [vmem:[#allocation8 + $0x260] ss:$16 sps:$4 sm:$0xff]  }
  0x3d   :  { %904 = vmatpush1.bf16.msra.mxu0 %v3628_v10  ;;  %v3642_v20 = vld [vmem:[#allocation8 + $0x44] ss:$16 sps:$4 sm:$0xff]   ;;  %v3646_v22 = vld [vmem:[#allocation8 + $0x40] ss:$16 sps:$4 sm:$0xff]   ;;  %v3710_v10 = vld [vmem:[#allocation8 + $0xec] ss:$16 sps:$4 sm:$0xff]  }
  0x3e   :  { %947 = vmatpush1.bf16.msra.mxu1 %v3629_v11  ;;  %905 = vmatprep.subr.bf16.mxu0 %v3630_v12  ;;  %v3644_v21 = vld [vmem:[#allocation8 + $0x244] ss:$16 sps:$4 sm:$0xff]   ;;  %v3647_v23 = vld [vmem:[#allocation8 + $0x240] ss:$16 sps:$4 sm:$0xff]   ;;  %v3713_v11 = vld [vmem:[#allocation8 + $0x2ec] ss:$16 sps:$4 sm:$0xff]  }
  0x3f   :  { %948 = vmatprep.subr.bf16.mxu1 %v3632_v13  ;;  %v3648_v24 = vld [vmem:[#allocation8 + $0x24] ss:$16 sps:$4 sm:$0xff]   ;;  %v3652_v26 = vld [vmem:[#allocation8 + $0x20] ss:$16 sps:$4 sm:$0xff]  }
  0x40   :  { %v3650_v25 = vld [vmem:[#allocation8 + $0x224] ss:$16 sps:$4 sm:$0xff]   ;;  %v3653_v27 = vld [vmem:[#allocation8 + $0x220] ss:$16 sps:$4 sm:$0xff]  }
  0x41   :  { %906 = vmatpush1.bf16.msra.mxu0 %v3634_v14  ;;  %v3654_v28 = vld [vmem:[#allocation8 + $0x4] ss:$16 sps:$4 sm:$0xff]   ;;  %v3658_v30 = vld [vmem:[#allocation8] ss:$16 sps:$4 sm:$0xff]   ;;  %v3708_v14 = vld [vmem:[#allocation8 + $0xe8] ss:$16 sps:$4 sm:$0xff]  }
  0x42   :  { %949 = vmatpush1.bf16.msra.mxu1 %v3635_v15  ;;  %907 = vmatprep.subr.bf16.mxu0 %v3636_v16  ;;  %v3656_v29 = vld [vmem:[#allocation8 + $0x204] ss:$16 sps:$4 sm:$0xff]   ;;  %v3659_v31 = vld [vmem:[#allocation8 + $0x200] ss:$16 sps:$4 sm:$0xff]   ;;  %v3711_v15 = vld [vmem:[#allocation8 + $0x2e8] ss:$16 sps:$4 sm:$0xff]  }
  0x43   :  { %950 = vmatprep.subr.bf16.mxu1 %v3638_v17  ;;  %v3660_v32 = vld [vmem:[#allocation8 + $0x1e4] ss:$16 sps:$4 sm:$0xff]   ;;  %v3664_v34 = vld [vmem:[#allocation8 + $0x1e0] ss:$16 sps:$4 sm:$0xff]   ;;  %v3716_v16 = vld [vmem:[#allocation8 + $0xcc] ss:$16 sps:$4 sm:$0xff]  }
  0x44   :  { %v3662_v33 = vld [vmem:[#allocation8 + $0x3e4] ss:$16 sps:$4 sm:$0xff]   ;;  %v3665_v35 = vld [vmem:[#allocation8 + $0x3e0] ss:$16 sps:$4 sm:$0xff]   ;;  %v3719_v17 = vld [vmem:[#allocation8 + $0x2cc] ss:$16 sps:$4 sm:$0xff]  }
  0x45   :  { %908 = vmatpush1.bf16.msra.mxu0 %v3640_v18  ;;  %v3666_v36 = vld [vmem:[#allocation8 + $0x1c4] ss:$16 sps:$4 sm:$0xff]   ;;  %v3670_v38 = vld [vmem:[#allocation8 + $0x1c0] ss:$16 sps:$4 sm:$0xff]   ;;  %v3714_v18 = vld [vmem:[#allocation8 + $0xc8] ss:$16 sps:$4 sm:$0xff]  }
  0x46   :  { %951 = vmatpush1.bf16.msra.mxu1 %v3641_v19  ;;  %909 = vmatprep.subr.bf16.mxu0 %v3642_v20  ;;  %v3668_v37 = vld [vmem:[#allocation8 + $0x3c4] ss:$16 sps:$4 sm:$0xff]   ;;  %v3671_v39 = vld [vmem:[#allocation8 + $0x3c0] ss:$16 sps:$4 sm:$0xff]   ;;  %v3717_v19 = vld [vmem:[#allocation8 + $0x2c8] ss:$16 sps:$4 sm:$0xff]  }
  0x47   :  { %952 = vmatprep.subr.bf16.mxu1 %v3644_v21  ;;  %v3672_v40 = vld [vmem:[#allocation8 + $0x1a4] ss:$16 sps:$4 sm:$0xff]   ;;  %v3676_v42 = vld [vmem:[#allocation8 + $0x1a0] ss:$16 sps:$4 sm:$0xff]   ;;  %v3722_v20 = vld [vmem:[#allocation8 + $0xac] ss:$16 sps:$4 sm:$0xff]  }
  0x48   :  { %v3674_v41 = vld [vmem:[#allocation8 + $0x3a4] ss:$16 sps:$4 sm:$0xff]   ;;  %v3677_v43 = vld [vmem:[#allocation8 + $0x3a0] ss:$16 sps:$4 sm:$0xff]   ;;  %v3725_v21 = vld [vmem:[#allocation8 + $0x2ac] ss:$16 sps:$4 sm:$0xff]  }
  0x49   :  { %910 = vmatpush1.bf16.msra.mxu0 %v3646_v22  ;;  %v3678_v44 = vld [vmem:[#allocation8 + $0x184] ss:$16 sps:$4 sm:$0xff]   ;;  %v3682_v50 = vld [vmem:[#allocation8 + $0x180] ss:$16 sps:$4 sm:$0xff]   ;;  %v3720_v22 = vld [vmem:[#allocation8 + $0xa8] ss:$16 sps:$4 sm:$0xff]  }
  0x4a   :  { %953 = vmatpush1.bf16.msra.mxu1 %v3647_v23  ;;  %911 = vmatprep.subr.bf16.mxu0 %v3648_v24  ;;  %v3680_v45 = vld [vmem:[#allocation8 + $0x384] ss:$16 sps:$4 sm:$0xff]   ;;  %v3683_v51 = vld [vmem:[#allocation8 + $0x380] ss:$16 sps:$4 sm:$0xff]   ;;  %v3723_v23 = vld [vmem:[#allocation8 + $0x2a8] ss:$16 sps:$4 sm:$0xff]  }
  0x4b   :  { %954 = vmatprep.subr.bf16.mxu1 %v3650_v25  ;;  %v3684_v52 = vld [vmem:[#allocation8 + $0x164] ss:$16 sps:$4 sm:$0xff]   ;;  %v3688_v56 = vld [vmem:[#allocation8 + $0x160] ss:$16 sps:$4 sm:$0xff]   ;;  %v3728_v24 = vld [vmem:[#allocation8 + $0x8c] ss:$16 sps:$4 sm:$0xff]  }
  0x4c   :  { %v3686_v55 = vld [vmem:[#allocation8 + $0x364] ss:$16 sps:$4 sm:$0xff]   ;;  %v3689_v57 = vld [vmem:[#allocation8 + $0x360] ss:$16 sps:$4 sm:$0xff]   ;;  %v3731_v25 = vld [vmem:[#allocation8 + $0x28c] ss:$16 sps:$4 sm:$0xff]  }
  0x4d   :  { %912 = vmatpush1.bf16.msra.mxu0 %v3652_v26  ;;  %v3690_v58 = vld [vmem:[#allocation8 + $0x144] ss:$16 sps:$4 sm:$0xff]   ;;  %v3694_v60 = vld [vmem:[#allocation8 + $0x140] ss:$16 sps:$4 sm:$0xff]   ;;  %v3726_v26 = vld [vmem:[#allocation8 + $0x88] ss:$16 sps:$4 sm:$0xff]  }
  0x4e   :  { %955 = vmatpush1.bf16.msra.mxu1 %v3653_v27  ;;  %913 = vmatprep.subr.bf16.mxu0 %v3654_v28  ;;  %v3692_v59 = vld [vmem:[#allocation8 + $0x344] ss:$16 sps:$4 sm:$0xff]   ;;  %v3695_v61 = vld [vmem:[#allocation8 + $0x340] ss:$16 sps:$4 sm:$0xff]   ;;  %v3729_v27 = vld [vmem:[#allocation8 + $0x288] ss:$16 sps:$4 sm:$0xff]  }
  0x4f   :  { %956 = vmatprep.subr.bf16.mxu1 %v3656_v29  ;;  %v3696_v62 = vld [vmem:[#allocation8 + $0x124] ss:$16 sps:$4 sm:$0xff]   ;;  %v3700_v0 = vld [vmem:[#allocation8 + $0x120] ss:$16 sps:$4 sm:$0xff]   ;;  %v3734_v28 = vld [vmem:[#allocation8 + $0x6c] ss:$16 sps:$4 sm:$0xff]  }
  0x50   :  { %v3698_v63 = vld [vmem:[#allocation8 + $0x324] ss:$16 sps:$4 sm:$0xff]   ;;  %v3701_v1 = vld [vmem:[#allocation8 + $0x320] ss:$16 sps:$4 sm:$0xff]   ;;  %v3737_v29 = vld [vmem:[#allocation8 + $0x26c] ss:$16 sps:$4 sm:$0xff]  }
  0x51   :  { %914 = vmatpush1.bf16.msra.mxu0 %v3658_v30  ;;  %v3702_v2 = vld [vmem:[#allocation8 + $0x104] ss:$16 sps:$4 sm:$0xff]   ;;  %v3706_v4 = vld [vmem:[#allocation8 + $0x100] ss:$16 sps:$4 sm:$0xff]   ;;  %v3732_v30 = vld [vmem:[#allocation8 + $0x68] ss:$16 sps:$4 sm:$0xff]  }
  0x52   :  { %957 = vmatpush1.bf16.msra.mxu1 %v3659_v31  ;;  %915 = vmatprep.subr.bf16.mxu0 %v3660_v32  ;;  %v3704_v3 = vld [vmem:[#allocation8 + $0x304] ss:$16 sps:$4 sm:$0xff]   ;;  %v3707_v5 = vld [vmem:[#allocation8 + $0x300] ss:$16 sps:$4 sm:$0xff]   ;;  %v3735_v31 = vld [vmem:[#allocation8 + $0x268] ss:$16 sps:$4 sm:$0xff]  }
  0x53   :  { %958 = vmatprep.subr.bf16.mxu1 %v3662_v33  ;;  %v80_v6 = vld [vmem:[#allocation2] sm:$0xff]  ;;  %v82_v8 = vld [vmem:[#allocation2 + $0x10] sm:$0xff]  ;;  %v3740_v32 = vld [vmem:[#allocation8 + $0x4c] ss:$16 sps:$4 sm:$0xff]  }
  0x54   :  { %v84_v7 = vld [vmem:[#allocation2 + $0x20] sm:$0xff]  ;;  %v86_v9 = vld [vmem:[#allocation2 + $0x30] sm:$0xff]  ;;  %v3743_v33 = vld [vmem:[#allocation8 + $0x24c] ss:$16 sps:$4 sm:$0xff]  }
  0x55   :  { %916 = vmatpush2.bf16.msra.mxu0 %v3664_v34  ;;  %v4404_v12 = vpack.c.bf16 %v84_v7, %v80_v6  ;;  %v4406_v13 = vpack.c.bf16 %v86_v9, %v82_v8  ;;  %v3738_v34 = vld [vmem:[#allocation8 + $0x48] ss:$16 sps:$4 sm:$0xff]   ;;  %v3800_v8 = vld [vmem:[#allocation8 + $0x10c] ss:$16 sps:$4 sm:$0xff]  }
  0x56   :  { %959 = vmatpush2.bf16.msra.mxu1 %v3665_v35  ;;  %917 = vmatprep.subr.bf16.mxu0 %v3666_v36  ;;  %v3741_v35 = vld [vmem:[#allocation8 + $0x248] ss:$16 sps:$4 sm:$0xff]   ;;  %v3746_v36 = vld [vmem:[#allocation8 + $0x2c] ss:$16 sps:$4 sm:$0xff]  }
  0x57   :  { %960 = vmatprep.subr.bf16.mxu1 %v3668_v37  ;;  %v3749_v37 = vld [vmem:[#allocation8 + $0x22c] ss:$16 sps:$4 sm:$0xff]   ;;  %v3792_v6 = vld [vmem:[#allocation8 + $0x128] ss:$16 sps:$4 sm:$0xff]  }
  0x58   :  { %v3795_v7 = vld [vmem:[#allocation8 + $0x328] ss:$16 sps:$4 sm:$0xff]   ;;  %v3803_v9 = vld [vmem:[#allocation8 + $0x30c] ss:$16 sps:$4 sm:$0xff]  }
  0x59   :  { %918 = vmatpush2.bf16.msra.mxu0 %v3670_v38  ;;  %v3744_v38 = vld [vmem:[#allocation8 + $0x28] ss:$16 sps:$4 sm:$0xff]  }
  0x5a   :  { %961 = vmatpush2.bf16.msra.mxu1 %v3671_v39  ;;  %919 = vmatprep.subr.bf16.mxu0 %v3672_v40  ;;  %v3747_v39 = vld [vmem:[#allocation8 + $0x228] ss:$16 sps:$4 sm:$0xff]   ;;  %v3752_v40 = vld [vmem:[#allocation8 + $0xc] ss:$16 sps:$4 sm:$0xff]  }
  0x5b   :  { %962 = vmatprep.subr.bf16.mxu1 %v3674_v41  ;;  %v3755_v41 = vld [vmem:[#allocation8 + $0x20c] ss:$16 sps:$4 sm:$0xff]  }
  0x5d   :  { %920 = vmatpush2.bf16.msra.mxu0 %v3676_v42  ;;  %v3750_v42 = vld [vmem:[#allocation8 + $0x8] ss:$16 sps:$4 sm:$0xff]  }
  0x5e   :  { %963 = vmatpush2.bf16.msra.mxu1 %v3677_v43  ;;  %921 = vmatprep.subr.bf16.mxu0 %v3678_v44  ;;  %v3753_v43 = vld [vmem:[#allocation8 + $0x208] ss:$16 sps:$4 sm:$0xff]   ;;  %v3758_v44 = vld [vmem:[#allocation8 + $0x1ec] ss:$16 sps:$4 sm:$0xff]  }
  0x5f   :  { %964 = vmatprep.subr.bf16.mxu1 %v3680_v45  ;;  %v3761_v45 = vld [vmem:[#allocation8 + $0x3ec] ss:$16 sps:$4 sm:$0xff]  }
  0x61   :  { %922 = vmatpush2.bf16.msra.mxu0 %v3682_v50  ;;  %v3762_v50 = vld [vmem:[#allocation8 + $0x1c8] ss:$16 sps:$4 sm:$0xff]  }
  0x62   :  { %965 = vmatpush2.bf16.msra.mxu1 %v3683_v51  ;;  %923 = vmatprep.subr.bf16.mxu0 %v3684_v52  ;;  %v3765_v51 = vld [vmem:[#allocation8 + $0x3c8] ss:$16 sps:$4 sm:$0xff]   ;;  %v3770_v52 = vld [vmem:[#allocation8 + $0x1ac] ss:$16 sps:$4 sm:$0xff]  }
  0x63   :  { %966 = vmatprep.subr.bf16.mxu1 %v3686_v55  ;;  %v3771_v55 = vld [vmem:[#allocation8 + $0x3a8] ss:$16 sps:$4 sm:$0xff]  }
  0x65   :  { %924 = vmatpush2.bf16.msra.mxu0 %v3688_v56  ;;  %v3776_v56 = vld [vmem:[#allocation8 + $0x18c] ss:$16 sps:$4 sm:$0xff]  }
  0x66   :  { %967 = vmatpush2.bf16.msra.mxu1 %v3689_v57  ;;  %925 = vmatprep.subr.bf16.mxu0 %v3690_v58  ;;  %v3779_v57 = vld [vmem:[#allocation8 + $0x38c] ss:$16 sps:$4 sm:$0xff]   ;;  %v3774_v58 = vld [vmem:[#allocation8 + $0x188] ss:$16 sps:$4 sm:$0xff]  }
  0x67   :  { %968 = vmatprep.subr.bf16.mxu1 %v3692_v59  ;;  %v3777_v59 = vld [vmem:[#allocation8 + $0x388] ss:$16 sps:$4 sm:$0xff]  }
  0x69   :  { %926 = vmatpush2.bf16.msra.mxu0 %v3694_v60  ;;  %v3782_v60 = vld [vmem:[#allocation8 + $0x16c] ss:$16 sps:$4 sm:$0xff]  }
  0x6a   :  { %969 = vmatpush2.bf16.msra.mxu1 %v3695_v61  ;;  %927 = vmatprep.subr.bf16.mxu0 %v3696_v62  ;;  %v3785_v61 = vld [vmem:[#allocation8 + $0x36c] ss:$16 sps:$4 sm:$0xff]   ;;  %v3780_v62 = vld [vmem:[#allocation8 + $0x168] ss:$16 sps:$4 sm:$0xff]  }
  0x6b   :  { %970 = vmatprep.subr.bf16.mxu1 %v3698_v63  ;;  %v3783_v63 = vld [vmem:[#allocation8 + $0x368] ss:$16 sps:$4 sm:$0xff]  }
  0x6d   :  { %928 = vmatpush2.bf16.msra.mxu0 %v3700_v0  ;;  %v3788_v0 = vld [vmem:[#allocation8 + $0x14c] ss:$16 sps:$4 sm:$0xff]  }
  0x6e   :  { %971 = vmatpush2.bf16.msra.mxu1 %v3701_v1  ;;  %929 = vmatprep.subr.bf16.mxu0 %v3702_v2  ;;  %v3791_v1 = vld [vmem:[#allocation8 + $0x34c] ss:$16 sps:$4 sm:$0xff]   ;;  %v3786_v2 = vld [vmem:[#allocation8 + $0x148] ss:$16 sps:$4 sm:$0xff]  }
  0x6f   :  { %972 = vmatprep.subr.bf16.mxu1 %v3704_v3  ;;  %v3789_v3 = vld [vmem:[#allocation8 + $0x348] ss:$16 sps:$4 sm:$0xff]  }
  0x71   :  { %930 = vmatpush2.bf16.msra.mxu0 %v3706_v4  ;;  %v3794_v4 = vld [vmem:[#allocation8 + $0x12c] ss:$16 sps:$4 sm:$0xff]  }
  0x72   :  { %973 = vmatpush2.bf16.msra.mxu1 %v3707_v5  ;;  %985 = vmatprep.subr.bf16.mxu0 %v3710_v10  ;;  %v3797_v5 = vld [vmem:[#allocation8 + $0x32c] ss:$16 sps:$4 sm:$0xff]   ;;  %v3798_v10 = vld [vmem:[#allocation8 + $0x108] ss:$16 sps:$4 sm:$0xff]  }
  0x73   :  { %1028 = vmatprep.subr.bf16.mxu1 %v3713_v11  ;;  %v3801_v11 = vld [vmem:[#allocation8 + $0x308] ss:$16 sps:$4 sm:$0xff]  }
  0x74   :  { %932 = vmatmul.mubr.bf16.vlgmr.msra.gmra.mxu0 %v4404_v12 }
  0x75   :  { %975 = vmatmul.mubr.bf16.vlgmr.msra.gmra.mxu1 %v4406_v13  ;;  %986 = vmatpush1.bf16.msra.mxu0 %v3708_v14  ;;  %v3806_v14 = vld [vmem:[#allocation8 + $0x4e4] ss:$16 sps:$4 sm:$0xff]  }
  0x76   :  { %1029 = vmatpush1.bf16.msra.mxu1 %v3711_v15  ;;  %987 = vmatprep.subr.bf16.mxu0 %v3716_v16  ;;  %v3809_v15 = vld [vmem:[#allocation8 + $0x6e4] ss:$16 sps:$4 sm:$0xff]   ;;  %v3804_v16 = vld [vmem:[#allocation8 + $0x4e0] ss:$16 sps:$4 sm:$0xff]  }
  0x77   :  { %1030 = vmatprep.subr.bf16.mxu1 %v3719_v17  ;;  %1017 = vmatprep.mubr.bf16.mxu0 %v89_v53  ;;  %v3773_v53 = vld [vmem:[#allocation8 + $0x3ac] ss:$16 sps:$4 sm:$0xff]   ;;  %v3807_v17 = vld [vmem:[#allocation8 + $0x6e0] ss:$16 sps:$4 sm:$0xff]  }
  0x78   :  { %1060 = vmatprep.mubr.bf16.mxu1 %v91_v54  ;;  %v3768_v54 = vld [vmem:[#allocation8 + $0x1a8] ss:$16 sps:$4 sm:$0xff]  }
  0x79   :  { %988 = vmatpush1.bf16.msra.mxu0 %v3714_v18  ;;  %v3812_v18 = vld [vmem:[#allocation8 + $0x4c4] ss:$16 sps:$4 sm:$0xff]  }
  0x7a   :  { %1031 = vmatpush1.bf16.msra.mxu1 %v3717_v19  ;;  %989 = vmatprep.subr.bf16.mxu0 %v3722_v20  ;;  %v3815_v19 = vld [vmem:[#allocation8 + $0x6c4] ss:$16 sps:$4 sm:$0xff]   ;;  %v1100_v20 = vld [vmem:[#allocation5 + $0x8] sm:$0xff] }
  0x7b   :  { %1032 = vmatprep.subr.bf16.mxu1 %v3725_v21  ;;  %v1104_v21 = vld [vmem:[#allocation5 + $0x28] sm:$0xff] }
  0x7d   :  { %990 = vmatpush1.bf16.msra.mxu0 %v3720_v22  ;;  %v1102_v22 = vld [vmem:[#allocation5 + $0x18] sm:$0xff] }
  0x7e   :  { %1033 = vmatpush1.bf16.msra.mxu1 %v3723_v23  ;;  %991 = vmatprep.subr.bf16.mxu0 %v3728_v24  ;;  %v1106_v23 = vld [vmem:[#allocation5 + $0x38] sm:$0xff]  ;;  %v3810_v24 = vld [vmem:[#allocation8 + $0x4c0] ss:$16 sps:$4 sm:$0xff]  }
  0x7f   :  { %1034 = vmatprep.subr.bf16.mxu1 %v3731_v25  ;;  %v3813_v25 = vld [vmem:[#allocation8 + $0x6c0] ss:$16 sps:$4 sm:$0xff]  }
  0x81   :  { %992 = vmatpush1.bf16.msra.mxu0 %v3726_v26  ;;  %v3818_v26 = vld [vmem:[#allocation8 + $0x4a4] ss:$16 sps:$4 sm:$0xff]  }
  0x82   :  { %1035 = vmatpush1.bf16.msra.mxu1 %v3729_v27  ;;  %993 = vmatprep.subr.bf16.mxu0 %v3734_v28  ;;  %v4412_v27 = vpack.c.bf16 %v1104_v21, %v1100_v20  ;;  %v4414_v28 = vpack.c.bf16 %v1106_v23, %v1102_v22  ;;  %v1099_v20 = vld [vmem:[#allocation5] sm:$0xff]  ;;  %v1101_v22 = vld [vmem:[#allocation5 + $0x10] sm:$0xff] }
  0x83   :  { %1036 = vmatprep.subr.bf16.mxu1 %v3737_v29  ;;  %v3821_v29 = vld [vmem:[#allocation8 + $0x6a4] ss:$16 sps:$4 sm:$0xff]  }
  0x84   :  { %v1103_v21 = vld [vmem:[#allocation5 + $0x20] sm:$0xff]  ;;  %v1105_v23 = vld [vmem:[#allocation5 + $0x30] sm:$0xff] }
  0x85   :  { %994 = vmatpush1.bf16.msra.mxu0 %v3732_v30  ;;  %v3824_v30 = vld [vmem:[#allocation8 + $0x484] ss:$16 sps:$4 sm:$0xff]  }
  0x86   :  { %1037 = vmatpush1.bf16.msra.mxu1 %v3735_v31  ;;  %995 = vmatprep.subr.bf16.mxu0 %v3740_v32  ;;  %v3827_v31 = vld [vmem:[#allocation8 + $0x684] ss:$16 sps:$4 sm:$0xff]   ;;  %v3822_v32 = vld [vmem:[#allocation8 + $0x480] ss:$16 sps:$4 sm:$0xff]  }
  0x87   :  { %1038 = vmatprep.subr.bf16.mxu1 %v3743_v33  ;;  %v3825_v33 = vld [vmem:[#allocation8 + $0x680] ss:$16 sps:$4 sm:$0xff]  }
  0x89   :  { %996 = vmatpush1.bf16.msra.mxu0 %v3738_v34  ;;  %v3830_v34 = vld [vmem:[#allocation8 + $0x464] ss:$16 sps:$4 sm:$0xff]  }
  0x8a   :  { %1039 = vmatpush1.bf16.msra.mxu1 %v3741_v35  ;;  %997 = vmatprep.subr.bf16.mxu0 %v3746_v36  ;;  %v3833_v35 = vld [vmem:[#allocation8 + $0x664] ss:$16 sps:$4 sm:$0xff]   ;;  %v3828_v36 = vld [vmem:[#allocation8 + $0x460] ss:$16 sps:$4 sm:$0xff]  }
  0x8b   :  { %1040 = vmatprep.subr.bf16.mxu1 %v3749_v37  ;;  %v3831_v37 = vld [vmem:[#allocation8 + $0x660] ss:$16 sps:$4 sm:$0xff]  }
  0x8d   :  { %998 = vmatpush1.bf16.msra.mxu0 %v3744_v38  ;;  %v3836_v38 = vld [vmem:[#allocation8 + $0x444] ss:$16 sps:$4 sm:$0xff]  }
  0x8e   :  { %1041 = vmatpush1.bf16.msra.mxu1 %v3747_v39  ;;  %999 = vmatprep.subr.bf16.mxu0 %v3752_v40  ;;  %v3839_v39 = vld [vmem:[#allocation8 + $0x644] ss:$16 sps:$4 sm:$0xff]   ;;  %v3834_v40 = vld [vmem:[#allocation8 + $0x440] ss:$16 sps:$4 sm:$0xff]  }
  0x8f   :  { %1042 = vmatprep.subr.bf16.mxu1 %v3755_v41  ;;  %v3837_v41 = vld [vmem:[#allocation8 + $0x640] ss:$16 sps:$4 sm:$0xff]  }
  0x91   :  { %1000 = vmatpush1.bf16.msra.mxu0 %v3750_v42  ;;  %v3842_v42 = vld [vmem:[#allocation8 + $0x424] ss:$16 sps:$4 sm:$0xff]  }
  0x92   :  { %1043 = vmatpush1.bf16.msra.mxu1 %v3753_v43  ;;  %1001 = vmatprep.subr.bf16.mxu0 %v3758_v44  ;;  %v3845_v43 = vld [vmem:[#allocation8 + $0x624] ss:$16 sps:$4 sm:$0xff]   ;;  %v3840_v44 = vld [vmem:[#allocation8 + $0x420] ss:$16 sps:$4 sm:$0xff]  }
  0x93   :  { %1044 = vmatprep.subr.bf16.mxu1 %v3761_v45  ;;  %v3843_v45 = vld [vmem:[#allocation8 + $0x620] ss:$16 sps:$4 sm:$0xff]  }
  0x95   :  { %1002 = vmatpush2.bf16.msra.mxu0 %v3756_v46  ;;  %v3848_v46 = vld [vmem:[#allocation8 + $0x404] ss:$16 sps:$4 sm:$0xff]  }
  0x96   :  { %1045 = vmatpush2.bf16.msra.mxu1 %v3759_v47  ;;  %1003 = vmatprep.subr.bf16.mxu0 %v3764_v48  ;;  %v3851_v47 = vld [vmem:[#allocation8 + $0x604] ss:$16 sps:$4 sm:$0xff]   ;;  %v3846_v48 = vld [vmem:[#allocation8 + $0x400] ss:$16 sps:$4 sm:$0xff]  }
  0x97   :  { %1046 = vmatprep.subr.bf16.mxu1 %v3767_v49  ;;  %v3849_v49 = vld [vmem:[#allocation8 + $0x600] ss:$16 sps:$4 sm:$0xff]  }
  0x99   :  { %1004 = vmatpush2.bf16.msra.mxu0 %v3762_v50  ;;  %v3854_v50 = vld [vmem:[#allocation8 + $0x5e4] ss:$16 sps:$4 sm:$0xff]  }
  0x9a   :  { %1047 = vmatpush2.bf16.msra.mxu1 %v3765_v51  ;;  %1005 = vmatprep.subr.bf16.mxu0 %v3770_v52  ;;  %v3857_v51 = vld [vmem:[#allocation8 + $0x7e4] ss:$16 sps:$4 sm:$0xff]   ;;  %v3852_v52 = vld [vmem:[#allocation8 + $0x5e0] ss:$16 sps:$4 sm:$0xff]  }
  0x9b   :  { %1048 = vmatprep.subr.bf16.mxu1 %v3773_v53  ;;  %v3855_v53 = vld [vmem:[#allocation8 + $0x7e0] ss:$16 sps:$4 sm:$0xff]  }
  0x9d   :  { %1006 = vmatpush2.bf16.msra.mxu0 %v3768_v54  ;;  %v3860_v54 = vld [vmem:[#allocation8 + $0x5c4] ss:$16 sps:$4 sm:$0xff]  }
  0x9e   :  { %1049 = vmatpush2.bf16.msra.mxu1 %v3771_v55  ;;  %1007 = vmatprep.subr.bf16.mxu0 %v3776_v56  ;;  %v3863_v55 = vld [vmem:[#allocation8 + $0x7c4] ss:$16 sps:$4 sm:$0xff]   ;;  %v3858_v56 = vld [vmem:[#allocation8 + $0x5c0] ss:$16 sps:$4 sm:$0xff]  }
  0x9f   :  { %1050 = vmatprep.subr.bf16.mxu1 %v3779_v57  ;;  %v3861_v57 = vld [vmem:[#allocation8 + $0x7c0] ss:$16 sps:$4 sm:$0xff]  }
  0xa1   :  { %1008 = vmatpush2.bf16.msra.mxu0 %v3774_v58  ;;  %v3866_v58 = vld [vmem:[#allocation8 + $0x5a4] ss:$16 sps:$4 sm:$0xff]  }
  0xa2   :  { %1051 = vmatpush2.bf16.msra.mxu1 %v3777_v59  ;;  %1009 = vmatprep.subr.bf16.mxu0 %v3782_v60  ;;  %v3869_v59 = vld [vmem:[#allocation8 + $0x7a4] ss:$16 sps:$4 sm:$0xff]   ;;  %v3864_v60 = vld [vmem:[#allocation8 + $0x5a0] ss:$16 sps:$4 sm:$0xff]  }
  0xa3   :  { %1052 = vmatprep.subr.bf16.mxu1 %v3785_v61  ;;  %v3867_v61 = vld [vmem:[#allocation8 + $0x7a0] ss:$16 sps:$4 sm:$0xff]  }
  0xa5   :  { %1010 = vmatpush2.bf16.msra.mxu0 %v3780_v62  ;;  %v3872_v62 = vld [vmem:[#allocation8 + $0x584] ss:$16 sps:$4 sm:$0xff]  }
  0xa6   :  { %1053 = vmatpush2.bf16.msra.mxu1 %v3783_v63  ;;  %1011 = vmatprep.subr.bf16.mxu0 %v3788_v0  ;;  %v3875_v63 = vld [vmem:[#allocation8 + $0x784] ss:$16 sps:$4 sm:$0xff]   ;;  %v3870_v0 = vld [vmem:[#allocation8 + $0x580] ss:$16 sps:$4 sm:$0xff]  }
  0xa7   :  { %1054 = vmatprep.subr.bf16.mxu1 %v3791_v1  ;;  %v3873_v1 = vld [vmem:[#allocation8 + $0x780] ss:$16 sps:$4 sm:$0xff]  }
  0xa9   :  { %1012 = vmatpush2.bf16.msra.mxu0 %v3786_v2  ;;  %v3878_v2 = vld [vmem:[#allocation8 + $0x564] ss:$16 sps:$4 sm:$0xff]  }
  0xaa   :  { %1055 = vmatpush2.bf16.msra.mxu1 %v3789_v3  ;;  %1013 = vmatprep.subr.bf16.mxu0 %v3794_v4  ;;  %v3881_v3 = vld [vmem:[#allocation8 + $0x764] ss:$16 sps:$4 sm:$0xff]   ;;  %v3876_v4 = vld [vmem:[#allocation8 + $0x560] ss:$16 sps:$4 sm:$0xff]  }
  0xab   :  { %1056 = vmatprep.subr.bf16.mxu1 %v3797_v5  ;;  %v3879_v5 = vld [vmem:[#allocation8 + $0x760] ss:$16 sps:$4 sm:$0xff]  }
  0xad   :  { %1014 = vmatpush2.bf16.msra.mxu0 %v3792_v6  ;;  %v3884_v6 = vld [vmem:[#allocation8 + $0x544] ss:$16 sps:$4 sm:$0xff]  }
  0xae   :  { %1057 = vmatpush2.bf16.msra.mxu1 %v3795_v7  ;;  %1015 = vmatprep.subr.bf16.mxu0 %v3800_v8  ;;  %v3887_v7 = vld [vmem:[#allocation8 + $0x744] ss:$16 sps:$4 sm:$0xff]   ;;  %v3882_v8 = vld [vmem:[#allocation8 + $0x540] ss:$16 sps:$4 sm:$0xff]  }
  0xaf   :  { %1058 = vmatprep.subr.bf16.mxu1 %v3803_v9  ;;  %v3885_v9 = vld [vmem:[#allocation8 + $0x740] ss:$16 sps:$4 sm:$0xff]  }
  0xb1   :  { %1016 = vmatpush2.bf16.msra.mxu0 %v3798_v10  ;;  %v3890_v10 = vld [vmem:[#allocation8 + $0x524] ss:$16 sps:$4 sm:$0xff]  }
  0xb2   :  { %1059 = vmatpush2.bf16.msra.mxu1 %v3801_v11  ;;  %1920 = vmatprep.subr.bf16.mxu0 %v3806_v14  ;;  %v3893_v11 = vld [vmem:[#allocation8 + $0x724] ss:$16 sps:$4 sm:$0xff]   ;;  %v3888_v14 = vld [vmem:[#allocation8 + $0x520] ss:$16 sps:$4 sm:$0xff]  }
  0xb3   :  { %1963 = vmatprep.subr.bf16.mxu1 %v3809_v15  ;;  %v3891_v15 = vld [vmem:[#allocation8 + $0x720] ss:$16 sps:$4 sm:$0xff]  }
  0xb4   :  { %1018 = vmatmul.mubr.bf16.vlgmr.msra.gmra.mxu0 %v4404_v12  ;;  %v3816_v12 = vld [vmem:[#allocation8 + $0x4a0] ss:$16 sps:$4 sm:$0xff]  }
  0xb5   :  { %1061 = vmatmul.mubr.bf16.vlgmr.msra.gmra.mxu1 %v4406_v13  ;;  %1921 = vmatpush1.bf16.msra.mxu0 %v3804_v16  ;;  %v3819_v13 = vld [vmem:[#allocation8 + $0x6a0] ss:$16 sps:$4 sm:$0xff]   ;;  %v3896_v16 = vld [vmem:[#allocation8 + $0x504] ss:$16 sps:$4 sm:$0xff]  }
  0xb6   :  { %1964 = vmatpush1.bf16.msra.mxu1 %v3807_v17  ;;  %1922 = vmatprep.subr.bf16.mxu0 %v3812_v18  ;;  %v3899_v17 = vld [vmem:[#allocation8 + $0x704] ss:$16 sps:$4 sm:$0xff]   ;;  %v3894_v18 = vld [vmem:[#allocation8 + $0x500] ss:$16 sps:$4 sm:$0xff]  }
  0xb7   :  { %1965 = vmatprep.subr.bf16.mxu1 %v3815_v19  ;;  %1952 = vmatprep.mubr.bf16.mxu0 %v4412_v27  ;;  %v3897_v19 = vld [vmem:[#allocation8 + $0x700] ss:$16 sps:$4 sm:$0xff]  }
  0xb8   :  { %1995 = vmatprep.mubr.bf16.mxu1 %v4414_v28 }
  0xb9   :  { %1923 = vmatpush1.bf16.msra.mxu0 %v3810_v24  ;;  %v3902_v24 = vld [vmem:[#allocation8 + $0x4ec] ss:$16 sps:$4 sm:$0xff]  }
  0xba   :  { %1966 = vmatpush1.bf16.msra.mxu1 %v3813_v25  ;;  %1924 = vmatprep.subr.bf16.mxu0 %v3818_v26  ;;  %v3905_v25 = vld [vmem:[#allocation8 + $0x6ec] ss:$16 sps:$4 sm:$0xff]   ;;  %v4418_v26 = vpack.c.bf16 %v1103_v21, %v1099_v20 }
  0xbb   :  { %1967 = vmatprep.subr.bf16.mxu1 %v3821_v29  ;;  %v4420_v29 = vpack.c.bf16 %v1105_v23, %v1101_v22  ;;  %v3989_v21 = vld [vmem:[#allocation8 + $0x72c] ss:$16 sps:$4 sm:$0xff]   ;;  %v220_v22 = vld [vmem:[%s4520_s4] sm:$0xf]  ;;  %v3984_v23 = vld [vmem:[#allocation8 + $0x528] ss:$16 sps:$4 sm:$0xff]  }
  0xbd   :  { %1925 = vmatpush1.bf16.msra.mxu0 %v3816_v12  ;;  %v3900_v12 = vld [vmem:[#allocation8 + $0x4e8] ss:$16 sps:$4 sm:$0xff]  }
  0xbe   :  { %1968 = vmatpush1.bf16.msra.mxu1 %v3819_v13  ;;  %1926 = vmatprep.subr.bf16.mxu0 %v3824_v30  ;;  %v3903_v13 = vld [vmem:[#allocation8 + $0x6e8] ss:$16 sps:$4 sm:$0xff]   ;;  %v3908_v30 = vld [vmem:[#allocation8 + $0x4cc] ss:$16 sps:$4 sm:$0xff]  }
  0xbf   :  { %1969 = vmatprep.subr.bf16.mxu1 %v3827_v31  ;;  %v3911_v31 = vld [vmem:[#allocation8 + $0x6cc] ss:$16 sps:$4 sm:$0xff]  }
  0xc1   :  { %1927 = vmatpush1.bf16.msra.mxu0 %v3822_v32  ;;  %v3906_v32 = vld [vmem:[#allocation8 + $0x4c8] ss:$16 sps:$4 sm:$0xff]  }
  0xc2   :  { %1970 = vmatpush1.bf16.msra.mxu1 %v3825_v33  ;;  %1928 = vmatprep.subr.bf16.mxu0 %v3830_v34  ;;  %v3909_v33 = vld [vmem:[#allocation8 + $0x6c8] ss:$16 sps:$4 sm:$0xff]   ;;  %v3914_v34 = vld [vmem:[#allocation8 + $0x4ac] ss:$16 sps:$4 sm:$0xff]  }
  0xc3   :  { %1971 = vmatprep.subr.bf16.mxu1 %v3833_v35  ;;  %v3917_v35 = vld [vmem:[#allocation8 + $0x6ac] ss:$16 sps:$4 sm:$0xff]  }
  0xc5   :  { %1929 = vmatpush1.bf16.msra.mxu0 %v3828_v36  ;;  %v3912_v36 = vld [vmem:[#allocation8 + $0x4a8] ss:$16 sps:$4 sm:$0xff]  }
  0xc6   :  { %1972 = vmatpush1.bf16.msra.mxu1 %v3831_v37  ;;  %1930 = vmatprep.subr.bf16.mxu0 %v3836_v38  ;;  %v3915_v37 = vld [vmem:[#allocation8 + $0x6a8] ss:$16 sps:$4 sm:$0xff]   ;;  %v3920_v38 = vld [vmem:[#allocation8 + $0x48c] ss:$16 sps:$4 sm:$0xff]  }
  0xc7   :  { %1973 = vmatprep.subr.bf16.mxu1 %v3839_v39  ;;  %v3923_v39 = vld [vmem:[#allocation8 + $0x68c] ss:$16 sps:$4 sm:$0xff]  }
  0xc9   :  { %1931 = vmatpush1.bf16.msra.mxu0 %v3834_v40  ;;  %v3918_v40 = vld [vmem:[#allocation8 + $0x488] ss:$16 sps:$4 sm:$0xff]  }
  0xca   :  { %1974 = vmatpush1.bf16.msra.mxu1 %v3837_v41  ;;  %1932 = vmatprep.subr.bf16.mxu0 %v3842_v42  ;;  %v3921_v41 = vld [vmem:[#allocation8 + $0x688] ss:$16 sps:$4 sm:$0xff]   ;;  %v3926_v42 = vld [vmem:[#allocation8 + $0x46c] ss:$16 sps:$4 sm:$0xff]  }
  0xcb   :  { %1975 = vmatprep.subr.bf16.mxu1 %v3845_v43  ;;  %v3929_v43 = vld [vmem:[#allocation8 + $0x66c] ss:$16 sps:$4 sm:$0xff]  }
  0xcd   :  { %1933 = vmatpush1.bf16.msra.mxu0 %v3840_v44  ;;  %v3924_v44 = vld [vmem:[#allocation8 + $0x468] ss:$16 sps:$4 sm:$0xff]  }
  0xce   :  { %1976 = vmatpush1.bf16.msra.mxu1 %v3843_v45  ;;  %1934 = vmatprep.subr.bf16.mxu0 %v3848_v46  ;;  %v3935_v45 = vld [vmem:[#allocation8 + $0x64c] ss:$16 sps:$4 sm:$0xff]   ;;  %v3930_v46 = vld [vmem:[#allocation8 + $0x448] ss:$16 sps:$4 sm:$0xff]  }
  0xcf   :  { %1977 = vmatprep.subr.bf16.mxu1 %v3851_v47  ;;  %v3933_v47 = vld [vmem:[#allocation8 + $0x648] ss:$16 sps:$4 sm:$0xff]  }
  0xd1   :  { %1935 = vmatpush1.bf16.msra.mxu0 %v3846_v48  ;;  %v3938_v48 = vld [vmem:[#allocation8 + $0x42c] ss:$16 sps:$4 sm:$0xff]  }
  0xd2   :  { %1978 = vmatpush1.bf16.msra.mxu1 %v3849_v49  ;;  %1936 = vmatprep.subr.bf16.mxu0 %v3854_v50  ;;  %v3941_v49 = vld [vmem:[#allocation8 + $0x62c] ss:$16 sps:$4 sm:$0xff]   ;;  %v3936_v50 = vld [vmem:[#allocation8 + $0x428] ss:$16 sps:$4 sm:$0xff]  }
  0xd3   :  { %1979 = vmatprep.subr.bf16.mxu1 %v3857_v51  ;;  %v3939_v51 = vld [vmem:[#allocation8 + $0x628] ss:$16 sps:$4 sm:$0xff]  }
  0xd5   :  { %1937 = vmatpush2.bf16.msra.mxu0 %v3852_v52  ;;  %v3944_v52 = vld [vmem:[#allocation8 + $0x40c] ss:$16 sps:$4 sm:$0xff]  }
  0xd6   :  { %1980 = vmatpush2.bf16.msra.mxu1 %v3855_v53  ;;  %1938 = vmatprep.subr.bf16.mxu0 %v3860_v54  ;;  %v3947_v53 = vld [vmem:[#allocation8 + $0x60c] ss:$16 sps:$4 sm:$0xff]   ;;  %v3942_v54 = vld [vmem:[#allocation8 + $0x408] ss:$16 sps:$4 sm:$0xff]  }
  0xd7   :  { %1981 = vmatprep.subr.bf16.mxu1 %v3863_v55  ;;  %v3945_v55 = vld [vmem:[#allocation8 + $0x608] ss:$16 sps:$4 sm:$0xff]  }
  0xd9   :  { %1939 = vmatpush2.bf16.msra.mxu0 %v3858_v56  ;;  %v3950_v56 = vld [vmem:[#allocation8 + $0x5ec] ss:$16 sps:$4 sm:$0xff]  }
  0xda   :  { %1982 = vmatpush2.bf16.msra.mxu1 %v3861_v57  ;;  %1940 = vmatprep.subr.bf16.mxu0 %v3866_v58  ;;  %v3953_v57 = vld [vmem:[#allocation8 + $0x7ec] ss:$16 sps:$4 sm:$0xff]   ;;  %v3948_v58 = vld [vmem:[#allocation8 + $0x5e8] ss:$16 sps:$4 sm:$0xff]  }
  0xdb   :  { %1983 = vmatprep.subr.bf16.mxu1 %v3869_v59  ;;  %v3951_v59 = vld [vmem:[#allocation8 + $0x7e8] ss:$16 sps:$4 sm:$0xff]  }
  0xdd   :  { %1941 = vmatpush2.bf16.msra.mxu0 %v3864_v60  ;;  %v3956_v60 = vld [vmem:[#allocation8 + $0x5cc] ss:$16 sps:$4 sm:$0xff]  }
  0xde   :  { %1984 = vmatpush2.bf16.msra.mxu1 %v3867_v61  ;;  %1942 = vmatprep.subr.bf16.mxu0 %v3872_v62  ;;  %v3959_v61 = vld [vmem:[#allocation8 + $0x7cc] ss:$16 sps:$4 sm:$0xff]   ;;  %v3954_v62 = vld [vmem:[#allocation8 + $0x5c8] ss:$16 sps:$4 sm:$0xff]  }
  0xdf   :  { %1985 = vmatprep.subr.bf16.mxu1 %v3875_v63  ;;  %v3957_v63 = vld [vmem:[#allocation8 + $0x7c8] ss:$16 sps:$4 sm:$0xff]  }
  0xe1   :  { %1943 = vmatpush2.bf16.msra.mxu0 %v3870_v0  ;;  %v3962_v0 = vld [vmem:[#allocation8 + $0x5ac] ss:$16 sps:$4 sm:$0xff]  }
  0xe2   :  { %1986 = vmatpush2.bf16.msra.mxu1 %v3873_v1  ;;  %1944 = vmatprep.subr.bf16.mxu0 %v3878_v2  ;;  %v3965_v1 = vld [vmem:[#allocation8 + $0x7ac] ss:$16 sps:$4 sm:$0xff]   ;;  %v3960_v2 = vld [vmem:[#allocation8 + $0x5a8] ss:$16 sps:$4 sm:$0xff]  }
  0xe3   :  { %1987 = vmatprep.subr.bf16.mxu1 %v3881_v3  ;;  %v3963_v3 = vld [vmem:[#allocation8 + $0x7a8] ss:$16 sps:$4 sm:$0xff]  }
  0xe5   :  { %1945 = vmatpush2.bf16.msra.mxu0 %v3876_v4  ;;  %v3968_v4 = vld [vmem:[#allocation8 + $0x58c] ss:$16 sps:$4 sm:$0xff]  }
  0xe6   :  { %1988 = vmatpush2.bf16.msra.mxu1 %v3879_v5  ;;  %1946 = vmatprep.subr.bf16.mxu0 %v3884_v6  ;;  %v3971_v5 = vld [vmem:[#allocation8 + $0x78c] ss:$16 sps:$4 sm:$0xff]   ;;  %v3966_v6 = vld [vmem:[#allocation8 + $0x588] ss:$16 sps:$4 sm:$0xff]  }
  0xe7   :  { %1989 = vmatprep.subr.bf16.mxu1 %v3887_v7  ;;  %v3969_v7 = vld [vmem:[#allocation8 + $0x788] ss:$16 sps:$4 sm:$0xff]  }
  0xe9   :  { %1947 = vmatpush2.bf16.msra.mxu0 %v3882_v8  ;;  %v3974_v8 = vld [vmem:[#allocation8 + $0x56c] ss:$16 sps:$4 sm:$0xff]  }
  0xea   :  { %1990 = vmatpush2.bf16.msra.mxu1 %v3885_v9  ;;  %1948 = vmatprep.subr.bf16.mxu0 %v3890_v10  ;;  %v3977_v9 = vld [vmem:[#allocation8 + $0x76c] ss:$16 sps:$4 sm:$0xff]   ;;  %v3972_v10 = vld [vmem:[#allocation8 + $0x568] ss:$16 sps:$4 sm:$0xff]  }
  0xeb   :  { %1991 = vmatprep.subr.bf16.mxu1 %v3893_v11  ;;  %v3975_v11 = vld [vmem:[#allocation8 + $0x768] ss:$16 sps:$4 sm:$0xff]  }
  0xed   :  { %1949 = vmatpush2.bf16.msra.mxu0 %v3888_v14  ;;  %v223_v14 = vlaneseq }
  0xee   :  { %1992 = vmatpush2.bf16.msra.mxu1 %v3891_v15  ;;  %1950 = vmatprep.subr.bf16.mxu0 %v3896_v16  ;;  %v3980_v15 = vld [vmem:[#allocation8 + $0x54c] ss:$16 sps:$4 sm:$0xff]  }
  0xef   :  { %1993 = vmatprep.subr.bf16.mxu1 %v3899_v17  ;;  %v3983_v16 = vld [vmem:[#allocation8 + $0x74c] ss:$16 sps:$4 sm:$0xff]   ;;  %v3978_v17 = vld [vmem:[#allocation8 + $0x548] ss:$16 sps:$4 sm:$0xff]   ;;  %v4426_v20 = vshrl.u32 %v223_v14, 7 }
  0xf0   :  { %v4020_v14 = vld [vmem:[#allocation8 + $0x860] ss:$16 sps:$4 sm:$0xff]  }
  0xf1   :  { %1951 = vmatpush2.bf16.msra.mxu0 %v3894_v18  ;;  %v3981_v18 = vld [vmem:[#allocation8 + $0x748] ss:$16 sps:$4 sm:$0xff]  }
  0xf2   :  { %1994 = vmatpush2.bf16.msra.mxu1 %v3897_v19  ;;  %2006 = vmatprep.subr.bf16.mxu0 %v3902_v24  ;;  %v3986_v19 = vld [vmem:[#allocation8 + $0x52c] ss:$16 sps:$4 sm:$0xff]   ;;  %v3987_v24 = vld [vmem:[#allocation8 + $0x728] ss:$16 sps:$4 sm:$0xff]  }
  0xf3   :  { %2049 = vmatprep.subr.bf16.mxu1 %v3905_v25  ;;  %v4431_v25 = vunpack.c.l.bf16 %v220_v22  ;;  %v4037_v22 = vld [vmem:[#allocation8 + $0xa24] ss:$16 sps:$4 sm:$0xff]  }
  0xf4   :  { %1953 = vmatmul.mubr.bf16.vlgmr.msra.gmra.mxu0 %v4418_v26 }
  0xf5   :  { %1996 = vmatmul.mubr.bf16.vlgmr.msra.gmra.mxu1 %v4420_v29  ;;  %2007 = vmatpush1.bf16.msra.mxu0 %v3900_v12  ;;  %v4434_v12 = vsub.s32 0, %v4426_v20 }
  0xf6   :  { %2050 = vmatpush1.bf16.msra.mxu1 %v3903_v13  ;;  %2008 = vmatprep.subr.bf16.mxu0 %v3908_v30  ;;  %v3992_v13 = vld [vmem:[#allocation8 + $0x50c] ss:$16 sps:$4 sm:$0xff]  }
  0xf7   :  { %2051 = vmatprep.subr.bf16.mxu1 %v3911_v31  ;;  %2038 = vmatprep.mubr.bf16.mxu0 %v4412_v27  ;;  %v3927_v27 = vld [vmem:[#allocation8 + $0x668] ss:$16 sps:$4 sm:$0xff]   ;;  %v3995_v30 = vld [vmem:[#allocation8 + $0x70c] ss:$16 sps:$4 sm:$0xff]  }
  0xf8   :  { %2081 = vmatprep.mubr.bf16.mxu1 %v4414_v28  ;;  %v3932_v28 = vld [vmem:[#allocation8 + $0x44c] ss:$16 sps:$4 sm:$0xff]   ;;  %v3990_v31 = vld [vmem:[#allocation8 + $0x508] ss:$16 sps:$4 sm:$0xff]  }
  0xf9   :  { %2009 = vmatpush1.bf16.msra.mxu0 %v3906_v32  ;;  %v4437_v32 = vsub.s32 2, %v4426_v20 }
  0xfa   :  { %2052 = vmatpush1.bf16.msra.mxu1 %v3909_v33  ;;  %2010 = vmatprep.subr.bf16.mxu0 %v3914_v34  ;;  %v3993_v33 = vld [vmem:[#allocation8 + $0x708] ss:$16 sps:$4 sm:$0xff]   ;;  %v226_v34 = vrot.slane %v4431_v25, %v4434_v12 }
  0xfb   :  { %2053 = vmatprep.subr.bf16.mxu1 %v3917_v35  ;;  %v3998_v35 = vld [vmem:[#allocation8 + $0x8e4] ss:$16 sps:$4 sm:$0xff]  }
  0xfd   :  { %2011 = vmatpush1.bf16.msra.mxu0 %v3912_v36  ;;  %v4001_v36 = vld [vmem:[#allocation8 + $0xae4] ss:$16 sps:$4 sm:$0xff]  }
  0xfe   :  { %2054 = vmatpush1.bf16.msra.mxu1 %v3915_v37  ;;  %2012 = vmatprep.subr.bf16.mxu0 %v3920_v38  ;;  %v2121_v37 = vld [vmem:[#allocation7 + $0x8] sm:$0xff]  ;;  %v3996_v38 = vld [vmem:[#allocation8 + $0x8e0] ss:$16 sps:$4 sm:$0xff]  }
  0xff   :  { %2055 = vmatprep.subr.bf16.mxu1 %v3923_v39  ;;  %v230_v39 = vrot.slane %v4431_v25, %v4437_v32 }
 0x101   :  { %2013 = vmatpush1.bf16.msra.mxu0 %v3918_v40  ;;  %v2125_v40 = vld [vmem:[#allocation7 + $0x28] sm:$0xff] }
 0x102   :  { %2056 = vmatpush1.bf16.msra.mxu1 %v3921_v41  ;;  %2014 = vmatprep.subr.bf16.mxu0 %v3926_v42  ;;  %v2123_v41 = vld [vmem:[#allocation7 + $0x18] sm:$0xff] }
 0x103   :  { %2057 = vmatprep.subr.bf16.mxu1 %v3929_v43  ;;  %v2127_v42 = vld [vmem:[#allocation7 + $0x38] sm:$0xff]  ;;  %v246_v43 = vrot.slane %v226_v34, %v4434_v12  ;;  %v4046_v34 = vld [vmem:[#allocation8 + $0x9e4] ss:$16 sps:$4 sm:$0xff]  }
 0x105   :  { %2015 = vmatpush1.bf16.msra.mxu0 %v3924_v44  ;;  %v3999_v44 = vld [vmem:[#allocation8 + $0xae0] ss:$16 sps:$4 sm:$0xff]  }
 0x106   :  { %2058 = vmatpush1.bf16.msra.mxu1 %v3927_v27  ;;  %2016 = vmatprep.subr.bf16.mxu0 %v3932_v28  ;;  %v4004_v27 = vld [vmem:[#allocation8 + $0x8c4] ss:$16 sps:$4 sm:$0xff]  }
 0x107   :  { %2059 = vmatprep.subr.bf16.mxu1 %v3935_v45  ;;  %v4007_v28 = vld [vmem:[#allocation8 + $0xac4] ss:$16 sps:$4 sm:$0xff]   ;;  %v250_v45 = vrot.slane %v230_v39, %v4434_v12 }
 0x108   :  { %v4055_v39 = vld [vmem:[#allocation8 + $0xbc4] ss:$16 sps:$4 sm:$0xff]  }
 0x109   :  { %2017 = vmatpush1.bf16.msra.mxu0 %v3930_v46  ;;  %v4445_v46 = vpack.c.bf16 %v2125_v40, %v2121_v37  ;;  %v4047_v37 = vld [vmem:[#allocation8 + $0xbe0] ss:$16 sps:$4 sm:$0xff]  }
 0x10a   :  { %2060 = vmatpush1.bf16.msra.mxu1 %v3933_v47  ;;  %2018 = vmatprep.subr.bf16.mxu0 %v3938_v48  ;;  %v4447_v47 = vpack.c.bf16 %v2127_v42, %v2123_v41  ;;  %v4050_v40 = vld [vmem:[#allocation8 + $0x9c0] ss:$16 sps:$4 sm:$0xff]   ;;  %v4058_v42 = vld [vmem:[#allocation8 + $0x9a4] ss:$16 sps:$4 sm:$0xff]  }
 0x10b   :  { %2061 = vmatprep.subr.bf16.mxu1 %v3941_v49  ;;  %v4053_v41 = vld [vmem:[#allocation8 + $0xbc0] ss:$16 sps:$4 sm:$0xff]  }
 0x10d   :  { %2019 = vmatpush1.bf16.msra.mxu0 %v3936_v50  ;;  %v4002_v50 = vld [vmem:[#allocation8 + $0x8c0] ss:$16 sps:$4 sm:$0xff]  }
 0x10e   :  { %2062 = vmatpush1.bf16.msra.mxu1 %v3939_v51  ;;  %2020 = vmatprep.subr.bf16.mxu0 %v3944_v52  ;;  %v4005_v52 = vld [vmem:[#allocation8 + $0xac0] ss:$16 sps:$4 sm:$0xff]  }
 0x10f   :  { %2063 = vmatprep.subr.bf16.mxu1 %v3947_v53 }
 0x111   :  { %2021 = vmatpush1.bf16.msra.mxu0 %v3942_v54 }
 0x112   :  { %2064 = vmatpush1.bf16.msra.mxu1 %v3945_v55  ;;  %2022 = vmatprep.subr.bf16.mxu0 %v3950_v56  ;;  %v4010_v55 = vld [vmem:[#allocation8 + $0x8a4] ss:$16 sps:$4 sm:$0xff]  }
 0x113   :  { %2065 = vmatprep.subr.bf16.mxu1 %v3953_v57  ;;  %v4013_v56 = vld [vmem:[#allocation8 + $0xaa4] ss:$16 sps:$4 sm:$0xff]  }
 0x115   :  { %2023 = vmatpush2.bf16.msra.mxu0 %v3948_v58 }
 0x116   :  { %2066 = vmatpush2.bf16.msra.mxu1 %v3951_v59  ;;  %2024 = vmatprep.subr.bf16.mxu0 %v3956_v60 }
 0x117   :  { %2067 = vmatprep.subr.bf16.mxu1 %v3959_v61  ;;  %v4008_v61 = vld [vmem:[#allocation8 + $0x8a0] ss:$16 sps:$4 sm:$0xff]  }
 0x119   :  { %2025 = vmatpush2.bf16.msra.mxu0 %v3954_v62  ;;  %v4011_v62 = vld [vmem:[#allocation8 + $0xaa0] ss:$16 sps:$4 sm:$0xff]  }
 0x11a   :  { %2068 = vmatpush2.bf16.msra.mxu1 %v3957_v63  ;;  %2026 = vmatprep.subr.bf16.mxu0 %v3962_v0  ;;  %v4016_v0 = vld [vmem:[#allocation8 + $0x884] ss:$16 sps:$4 sm:$0xff]  }
 0x11b   :  { %2069 = vmatprep.subr.bf16.mxu1 %v3965_v1  ;;  %v4019_v1 = vld [vmem:[#allocation8 + $0xa84] ss:$16 sps:$4 sm:$0xff]  }
 0x11d   :  { %2027 = vmatpush2.bf16.msra.mxu0 %v3960_v2 }
 0x11e   :  { %2070 = vmatpush2.bf16.msra.mxu1 %v3963_v3  ;;  %2028 = vmatprep.subr.bf16.mxu0 %v3968_v4 }
 0x11f   :  { %2071 = vmatprep.subr.bf16.mxu1 %v3971_v5 }
 0x121   :  { %2029 = vmatpush2.bf16.msra.mxu0 %v3966_v6 }
 0x122   :  { %2072 = vmatpush2.bf16.msra.mxu1 %v3969_v7  ;;  %2030 = vmatprep.subr.bf16.mxu0 %v3974_v8  ;;  %v4014_v7 = vld [vmem:[#allocation8 + $0x880] ss:$16 sps:$4 sm:$0xff]  }
 0x123   :  { %2073 = vmatprep.subr.bf16.mxu1 %v3977_v9  ;;  %v4017_v8 = vld [vmem:[#allocation8 + $0xa80] ss:$16 sps:$4 sm:$0xff]   ;;  %v4022_v9 = vld [vmem:[#allocation8 + $0x864] ss:$16 sps:$4 sm:$0xff]  }
 0x125   :  { %2031 = vmatpush2.bf16.msra.mxu0 %v3972_v10  ;;  %v4025_v10 = vld [vmem:[#allocation8 + $0xa64] ss:$16 sps:$4 sm:$0xff]  }
 0x126   :  { %2074 = vmatpush2.bf16.msra.mxu1 %v3975_v11  ;;  %2032 = vmatprep.subr.bf16.mxu0 %v3980_v15  ;;  %v4023_v15 = vld [vmem:[#allocation8 + $0xa60] ss:$16 sps:$4 sm:$0xff]  }
 0x127   :  { %2075 = vmatprep.subr.bf16.mxu1 %v3983_v16  ;;  %v4028_v16 = vld [vmem:[#allocation8 + $0x844] ss:$16 sps:$4 sm:$0xff]  }
 0x129   :  { %2033 = vmatpush2.bf16.msra.mxu0 %v3978_v17  ;;  %v4031_v17 = vld [vmem:[#allocation8 + $0xa44] ss:$16 sps:$4 sm:$0xff]  }
 0x12a   :  { %2076 = vmatpush2.bf16.msra.mxu1 %v3981_v18  ;;  %2034 = vmatprep.subr.bf16.mxu0 %v3986_v19  ;;  %v4026_v18 = vld [vmem:[#allocation8 + $0x840] ss:$16 sps:$4 sm:$0xff]  }
 0x12b   :  { %2077 = vmatprep.subr.bf16.mxu1 %v3989_v21  ;;  %v4029_v19 = vld [vmem:[#allocation8 + $0xa40] ss:$16 sps:$4 sm:$0xff]   ;;  %v4034_v21 = vld [vmem:[#allocation8 + $0x824] ss:$16 sps:$4 sm:$0xff]  }
 0x12d   :  { %2035 = vmatpush2.bf16.msra.mxu0 %v3984_v23  ;;  %v4032_v23 = vld [vmem:[#allocation8 + $0x820] ss:$16 sps:$4 sm:$0xff]  }
 0x12e   :  { %2078 = vmatpush2.bf16.msra.mxu1 %v3987_v24  ;;  %2036 = vmatprep.subr.bf16.mxu0 %v3992_v13  ;;  %v4035_v24 = vld [vmem:[#allocation8 + $0xa20] ss:$16 sps:$4 sm:$0xff]   ;;  %v4040_v13 = vld [vmem:[#allocation8 + $0x804] ss:$16 sps:$4 sm:$0xff]  }
 0x12f   :  { %2079 = vmatprep.subr.bf16.mxu1 %v3995_v30  ;;  %v4043_v30 = vld [vmem:[#allocation8 + $0xa04] ss:$16 sps:$4 sm:$0xff]  }
 0x131   :  { %2037 = vmatpush2.bf16.msra.mxu0 %v3990_v31  ;;  %v4038_v31 = vld [vmem:[#allocation8 + $0x800] ss:$16 sps:$4 sm:$0xff]  }
 0x132   :  { %2080 = vmatpush2.bf16.msra.mxu1 %v3993_v33  ;;  %2941 = vmatprep.subr.bf16.mxu0 %v3998_v35  ;;  %v4041_v33 = vld [vmem:[#allocation8 + $0xa00] ss:$16 sps:$4 sm:$0xff]   ;;  %v4049_v35 = vld [vmem:[#allocation8 + $0xbe4] ss:$16 sps:$4 sm:$0xff]  }
 0x133   :  { %2984 = vmatprep.subr.bf16.mxu1 %v4001_v36  ;;  %v4044_v36 = vld [vmem:[#allocation8 + $0x9e0] ss:$16 sps:$4 sm:$0xff]  }
 0x134   :  { %v933_v48 = vpop.f32.mrf.mxu0  ;;  %2039 = vmatmul.mubr.bf16.vlgmr.msra.gmra.mxu0 %v4418_v26 }
 0x135   :  { %v976_v49 = vpop.f32.mrf.mxu1  ;;  %2082 = vmatmul.mubr.bf16.vlgmr.msra.gmra.mxu1 %v4420_v29  ;;  %v934_v51 = vadd.f32 %v933_v48, %v246_v43  ;;  %2942 = vmatpush1.bf16.msra.mxu0 %v3996_v38  ;;  %v4052_v38 = vld [vmem:[#allocation8 + $0x9c4] ss:$16 sps:$4 sm:$0xff]   ;;  %v4062_v48 = vld [vmem:[#allocation8 + $0x980] ss:$16 sps:$4 sm:$0xff]  }
 0x136   :  { %2985 = vmatpush1.bf16.msra.mxu1 %v3999_v44  ;;  %v935_v53 = vpop.f32.mrf.mxu0  ;;  %2943 = vmatprep.subr.bf16.mxu0 %v4004_v27  ;;  %v4056_v44 = vld [vmem:[#allocation8 + $0x9a0] ss:$16 sps:$4 sm:$0xff]  }
 0x137   :  { %v978_v54 = vpop.f32.mrf.mxu1  ;;  %2986 = vmatprep.subr.bf16.mxu1 %v4007_v28  ;;  %v977_v57 = vadd.f32 %v976_v49, %v934_v51  ;;  %v936_v58 = vadd.f32 %v935_v53, %v250_v45  ;;  %2973 = vmatprep.mubr.bf16.mxu0 %v4445_v46  ;;  %v4059_v27 = vld [vmem:[#allocation8 + $0xba0] ss:$16 sps:$4 sm:$0xff]   ;;  %v4064_v28 = vld [vmem:[#allocation8 + $0x984] ss:$16 sps:$4 sm:$0xff]  }
 0x138   :  { %3016 = vmatprep.mubr.bf16.mxu1 %v4447_v47  ;;  %v937_v26 = vpop.f32.mrf.mxu0  ;;  %v4065_v49 = vld [vmem:[#allocation8 + $0xb80] ss:$16 sps:$4 sm:$0xff]   ;;  %v4073_v51 = vld [vmem:[#allocation8 + $0xb64] ss:$16 sps:$4 sm:$0xff]  }
 0x139   :  { %v980_v59 = vpop.f32.mrf.mxu1  ;;  %v979_v29 = vadd.f32 %v978_v54, %v936_v58  ;;  %v938_v60 = vadd.f32 %v937_v26, %v246_v43  ;;  %2944 = vmatpush1.bf16.msra.mxu0 %v4002_v50  ;;  %v4061_v43 = vld [vmem:[#allocation8 + $0xba4] ss:$16 sps:$4 sm:$0xff]   ;;  %v4071_v53 = vld [vmem:[#allocation8 + $0xb60] ss:$16 sps:$4 sm:$0xff]  }
 0x13a   :  { %2987 = vmatpush1.bf16.msra.mxu1 %v4005_v52  ;;  %v939_v63 = vpop.f32.mrf.mxu0  ;;  %2945 = vmatprep.subr.bf16.mxu0 %v4010_v55  ;;  %v4070_v50 = vld [vmem:[#allocation8 + $0x964] ss:$16 sps:$4 sm:$0xff]   ;;  %v4068_v52 = vld [vmem:[#allocation8 + $0x960] ss:$16 sps:$4 sm:$0xff]  }
 0x13b   :  { %2988 = vmatprep.subr.bf16.mxu1 %v4013_v56  ;;  %v3589_v2 = vpack.c.bf16 %v979_v29, %v977_v57  ;;  %v940_v3 = vadd.f32 %v939_v63, %v250_v45  ;;  %v982_v4 = vpop.f32.mrf.mxu1  ;;  %v981_v5 = vadd.f32 %v980_v59, %v938_v60  ;;  %v4067_v45 = vld [vmem:[#allocation8 + $0xb84] ss:$16 sps:$4 sm:$0xff]   ;;  %v4074_v56 = vld [vmem:[#allocation8 + $0x940] ss:$16 sps:$4 sm:$0xff]   ;;  %v4454_v60 = vsub.s32 4, %v4426_v20 }
 0x13c   :  { %v4076_v54 = vld [vmem:[#allocation8 + $0x944] ss:$16 sps:$4 sm:$0xff]   ;;  %v4077_v57 = vld [vmem:[#allocation8 + $0xb40] ss:$16 sps:$4 sm:$0xff]   ;;  %v4457_v63 = vsub.s32 6, %v4426_v20 }
 0x13d   :  { %1095 = vst [vmem:[#allocation10] sm:$0xff] %v3589_v2  ;;  %v983_v6 = vadd.f32 %v982_v4, %v940_v3  ;;  %2946 = vmatpush1.bf16.msra.mxu0 %v4008_v61  ;;  %v4079_v55 = vld [vmem:[#allocation8 + $0xb44] ss:$16 sps:$4 sm:$0xff]   ;;  %v4080_v59 = vld [vmem:[#allocation8 + $0x920] ss:$16 sps:$4 sm:$0xff]   ;;  %v234_v3 = vrot.slane %v4431_v25, %v4454_v60 }
 0x13e   :  { %2989 = vmatpush1.bf16.msra.mxu1 %v4011_v62  ;;  %2947 = vmatprep.subr.bf16.mxu0 %v4016_v0  ;;  %v4082_v58 = vld [vmem:[#allocation8 + $0x924] ss:$16 sps:$4 sm:$0xff]   ;;  %v4083_v29 = vld [vmem:[#allocation8 + $0xb20] ss:$16 sps:$4 sm:$0xff]  }
 0x13f   :  { %2990 = vmatprep.subr.bf16.mxu1 %v4019_v1  ;;  %v3591_v11 = vpack.c.bf16 %v983_v6, %v981_v5  ;;  %v4085_v26 = vld [vmem:[#allocation8 + $0xb24] ss:$16 sps:$4 sm:$0xff]   ;;  %v4086_v0 = vld [vmem:[#allocation8 + $0x900] ss:$16 sps:$4 sm:$0xff]  }
 0x140   :  { %v4088_v61 = vld [vmem:[#allocation8 + $0x904] ss:$16 sps:$4 sm:$0xff]   ;;  %v4089_v1 = vld [vmem:[#allocation8 + $0xb00] ss:$16 sps:$4 sm:$0xff]  }
 0x141   :  { %1097 = vst [vmem:[#allocation10 + $0x10] sm:$0xff] %v3591_v11  ;;  %2948 = vmatpush1.bf16.msra.mxu0 %v4014_v7  ;;  %v4091_v62 = vld [vmem:[#allocation8 + $0xb04] ss:$16 sps:$4 sm:$0xff]   ;;  %v4094_v7 = vld [vmem:[#allocation8 + $0x8ec] ss:$16 sps:$4 sm:$0xff]   ;;  %v254_v11 = vrot.slane %v234_v3, %v4434_v12 }
 0x142   :  { %2991 = vmatpush1.bf16.msra.mxu1 %v4017_v8  ;;  %2949 = vmatprep.subr.bf16.mxu0 %v4022_v9  ;;  %v2120_v2 = vld [vmem:[#allocation7] sm:$0xff]  ;;  %v2122_v5 = vld [vmem:[#allocation7 + $0x10] sm:$0xff]  ;;  %v4097_v8 = vld [vmem:[#allocation8 + $0xaec] ss:$16 sps:$4 sm:$0xff]   ;;  %v238_v9 = vrot.slane %v4431_v25, %v4457_v63 }
 0x143   :  { %2992 = vmatprep.subr.bf16.mxu1 %v4025_v10  ;;  %v2124_v4 = vld [vmem:[#allocation7 + $0x20] sm:$0xff]  ;;  %v2126_v6 = vld [vmem:[#allocation7 + $0x30] sm:$0xff]  ;;  %v4145_v3 = vld [vmem:[#allocation8 + $0xbec] ss:$16 sps:$4 sm:$0xff]  }
 0x144   :  { %v4463_v20 = vpack.c.bf16 %v2124_v4, %v2120_v2  ;;  %v4465_v10 = vpack.c.bf16 %v2126_v6, %v2122_v5  ;;  %v4142_v2 = vld [vmem:[#allocation8 + $0x9ec] ss:$16 sps:$4 sm:$0xff]   ;;  %v4140_v4 = vld [vmem:[#allocation8 + $0x9e8] ss:$16 sps:$4 sm:$0xff]  }
 0x145   :  { %2950 = vmatpush1.bf16.msra.mxu0 %v4020_v14  ;;  %v4092_v14 = vld [vmem:[#allocation8 + $0x8e8] ss:$16 sps:$4 sm:$0xff]   ;;  %v4148_v6 = vld [vmem:[#allocation8 + $0x9cc] ss:$16 sps:$4 sm:$0xff]  }
 0x146   :  { %2993 = vmatpush1.bf16.msra.mxu1 %v4023_v15  ;;  %2951 = vmatprep.subr.bf16.mxu0 %v4028_v16  ;;  %v4095_v15 = vld [vmem:[#allocation8 + $0xae8] ss:$16 sps:$4 sm:$0xff]   ;;  %v4100_v16 = vld [vmem:[#allocation8 + $0x8cc] ss:$16 sps:$4 sm:$0xff]  }
 0x147   :  { %2994 = vmatprep.subr.bf16.mxu1 %v4031_v17  ;;  %v4103_v17 = vld [vmem:[#allocation8 + $0xacc] ss:$16 sps:$4 sm:$0xff]   ;;  %v4143_v5 = vld [vmem:[#allocation8 + $0xbe8] ss:$16 sps:$4 sm:$0xff]  }
 0x149   :  { %2952 = vmatpush1.bf16.msra.mxu0 %v4026_v18  ;;  %v258_v18 = vrot.slane %v238_v9, %v4434_v12  ;;  %v4149_v9 = vld [vmem:[#allocation8 + $0xbc8] ss:$16 sps:$4 sm:$0xff]  }
 0x14a   :  { %2995 = vmatpush1.bf16.msra.mxu1 %v4029_v19  ;;  %2953 = vmatprep.subr.bf16.mxu0 %v4034_v21 }
 0x14b   :  { %2996 = vmatprep.subr.bf16.mxu1 %v4037_v22  ;;  %v4098_v22 = vld [vmem:[#allocation8 + $0x8c8] ss:$16 sps:$4 sm:$0xff]  }
 0x14d   :  { %2954 = vmatpush1.bf16.msra.mxu0 %v4032_v23  ;;  %v4101_v23 = vld [vmem:[#allocation8 + $0xac8] ss:$16 sps:$4 sm:$0xff]  }
 0x14e   :  { %2997 = vmatpush1.bf16.msra.mxu1 %v4035_v24  ;;  %2955 = vmatprep.subr.bf16.mxu0 %v4040_v13 }
 0x14f   :  { %2998 = vmatprep.subr.bf16.mxu1 %v4043_v30  ;;  %v4106_v30 = vld [vmem:[#allocation8 + $0x8ac] ss:$16 sps:$4 sm:$0xff]  }
 0x151   :  { %2956 = vmatpush1.bf16.msra.mxu0 %v4038_v31  ;;  %v4109_v31 = vld [vmem:[#allocation8 + $0xaac] ss:$16 sps:$4 sm:$0xff]  }
 0x152   :  { %2999 = vmatpush1.bf16.msra.mxu1 %v4041_v33  ;;  %2957 = vmatprep.subr.bf16.mxu0 %v4046_v34 }
 0x153   :  { %3000 = vmatprep.subr.bf16.mxu1 %v4049_v35 }
 0x155   :  { %2958 = vmatpush2.bf16.msra.mxu0 %v4044_v36 }
 0x156   :  { %3001 = vmatpush2.bf16.msra.mxu1 %v4047_v37  ;;  %2959 = vmatprep.subr.bf16.mxu0 %v4052_v38 }
 0x157   :  { %3002 = vmatprep.subr.bf16.mxu1 %v4055_v39  ;;  %v4104_v39 = vld [vmem:[#allocation8 + $0x8a8] ss:$16 sps:$4 sm:$0xff]  }
 0x159   :  { %2960 = vmatpush2.bf16.msra.mxu0 %v4050_v40  ;;  %v4107_v40 = vld [vmem:[#allocation8 + $0xaa8] ss:$16 sps:$4 sm:$0xff]  }
 0x15a   :  { %3003 = vmatpush2.bf16.msra.mxu1 %v4053_v41  ;;  %2961 = vmatprep.subr.bf16.mxu0 %v4058_v42  ;;  %v4112_v42 = vld [vmem:[#allocation8 + $0x88c] ss:$16 sps:$4 sm:$0xff]  }
 0x15b   :  { %3004 = vmatprep.subr.bf16.mxu1 %v4061_v43  ;;  %v4115_v43 = vld [vmem:[#allocation8 + $0xa8c] ss:$16 sps:$4 sm:$0xff]  }
 0x15d   :  { %2962 = vmatpush2.bf16.msra.mxu0 %v4056_v44 }
 0x15e   :  { %3005 = vmatpush2.bf16.msra.mxu1 %v4059_v27  ;;  %2963 = vmatprep.subr.bf16.mxu0 %v4064_v28 }
 0x15f   :  { %3006 = vmatprep.subr.bf16.mxu1 %v4067_v45 }
 0x161   :  { %2964 = vmatpush2.bf16.msra.mxu0 %v4062_v48  ;;  %v4113_v48 = vld [vmem:[#allocation8 + $0xa88] ss:$16 sps:$4 sm:$0xff]  }
 0x162   :  { %3007 = vmatpush2.bf16.msra.mxu1 %v4065_v49  ;;  %2965 = vmatprep.subr.bf16.mxu0 %v4070_v50  ;;  %v4118_v49 = vld [vmem:[#allocation8 + $0x86c] ss:$16 sps:$4 sm:$0xff]  }
 0x163   :  { %3008 = vmatprep.subr.bf16.mxu1 %v4073_v51  ;;  %v4121_v50 = vld [vmem:[#allocation8 + $0xa6c] ss:$16 sps:$4 sm:$0xff]  }
 0x165   :  { %2966 = vmatpush2.bf16.msra.mxu0 %v4068_v52  ;;  %v4116_v52 = vld [vmem:[#allocation8 + $0x868] ss:$16 sps:$4 sm:$0xff]  }
 0x166   :  { %3009 = vmatpush2.bf16.msra.mxu1 %v4071_v53  ;;  %2967 = vmatprep.subr.bf16.mxu0 %v4076_v54  ;;  %v4119_v53 = vld [vmem:[#allocation8 + $0xa68] ss:$16 sps:$4 sm:$0xff]   ;;  %v4124_v54 = vld [vmem:[#allocation8 + $0x84c] ss:$16 sps:$4 sm:$0xff]  }
 0x167   :  { %3010 = vmatprep.subr.bf16.mxu1 %v4079_v55  ;;  %v4127_v55 = vld [vmem:[#allocation8 + $0xa4c] ss:$16 sps:$4 sm:$0xff]  }
 0x169   :  { %2968 = vmatpush2.bf16.msra.mxu0 %v4074_v56  ;;  %v4122_v56 = vld [vmem:[#allocation8 + $0x848] ss:$16 sps:$4 sm:$0xff]  }
 0x16a   :  { %3011 = vmatpush2.bf16.msra.mxu1 %v4077_v57  ;;  %2969 = vmatprep.subr.bf16.mxu0 %v4082_v58  ;;  %v4125_v57 = vld [vmem:[#allocation8 + $0xa48] ss:$16 sps:$4 sm:$0xff]   ;;  %v4130_v58 = vld [vmem:[#allocation8 + $0x82c] ss:$16 sps:$4 sm:$0xff]  }
 0x16b   :  { %3012 = vmatprep.subr.bf16.mxu1 %v4085_v26  ;;  %v4133_v26 = vld [vmem:[#allocation8 + $0xa2c] ss:$16 sps:$4 sm:$0xff]  }
 0x16d   :  { %2970 = vmatpush2.bf16.msra.mxu0 %v4080_v59  ;;  %v4128_v59 = vld [vmem:[#allocation8 + $0x828] ss:$16 sps:$4 sm:$0xff]  }
 0x16e   :  { %3013 = vmatpush2.bf16.msra.mxu1 %v4083_v29  ;;  %2971 = vmatprep.subr.bf16.mxu0 %v4088_v61  ;;  %v4131_v29 = vld [vmem:[#allocation8 + $0xa28] ss:$16 sps:$4 sm:$0xff]   ;;  %v4136_v61 = vld [vmem:[#allocation8 + $0x80c] ss:$16 sps:$4 sm:$0xff]  }
 0x16f   :  { %3014 = vmatprep.subr.bf16.mxu1 %v4091_v62  ;;  %v4139_v62 = vld [vmem:[#allocation8 + $0xa0c] ss:$16 sps:$4 sm:$0xff]  }
 0x171   :  { %2972 = vmatpush2.bf16.msra.mxu0 %v4086_v0  ;;  %v4134_v0 = vld [vmem:[#allocation8 + $0x808] ss:$16 sps:$4 sm:$0xff]  }
 0x172   :  { %3015 = vmatpush2.bf16.msra.mxu1 %v4089_v1  ;;  %3027 = vmatprep.subr.bf16.mxu0 %v4094_v7  ;;  %v4137_v1 = vld [vmem:[#allocation8 + $0xa08] ss:$16 sps:$4 sm:$0xff]   ;;  %v4151_v7 = vld [vmem:[#allocation8 + $0xbcc] ss:$16 sps:$4 sm:$0xff]  }
 0x173   :  { %3070 = vmatprep.subr.bf16.mxu1 %v4097_v8  ;;  %v4146_v8 = vld [vmem:[#allocation8 + $0x9c8] ss:$16 sps:$4 sm:$0xff]  }
 0x174   :  { %v1019_v19 = vpop.f32.mrf.mxu0  ;;  %2974 = vmatmul.mubr.bf16.vlgmr.msra.gmra.mxu0 %v4463_v20 }
 0x175   :  { %v1062_v21 = vpop.f32.mrf.mxu1  ;;  %3017 = vmatmul.mubr.bf16.vlgmr.msra.gmra.mxu1 %v4465_v10  ;;  %v1020_v25 = vadd.f32 %v1019_v19, %v254_v11  ;;  %3028 = vmatpush1.bf16.msra.mxu0 %v4092_v14  ;;  %v4157_v14 = vld [vmem:[#allocation8 + $0xbac] ss:$16 sps:$4 sm:$0xff]   ;;  %v4158_v19 = vld [vmem:[#allocation8 + $0x988] ss:$16 sps:$4 sm:$0xff]  }
 0x176   :  { %3071 = vmatpush1.bf16.msra.mxu1 %v4095_v15  ;;  %v1021_v24 = vpop.f32.mrf.mxu0  ;;  %3029 = vmatprep.subr.bf16.mxu0 %v4100_v16  ;;  %v4152_v15 = vld [vmem:[#allocation8 + $0x9a8] ss:$16 sps:$4 sm:$0xff]  }
 0x177   :  { %v1064_v13 = vpop.f32.mrf.mxu1  ;;  %3072 = vmatprep.subr.bf16.mxu1 %v4103_v17  ;;  %v1063_v33 = vadd.f32 %v1062_v21, %v1020_v25  ;;  %v1022_v34 = vadd.f32 %v1021_v24, %v258_v18  ;;  %3059 = vmatprep.mubr.bf16.mxu0 %v4445_v46  ;;  %v4155_v16 = vld [vmem:[#allocation8 + $0xba8] ss:$16 sps:$4 sm:$0xff]   ;;  %v4160_v17 = vld [vmem:[#allocation8 + $0x98c] ss:$16 sps:$4 sm:$0xff]  }
 0x178   :  { %3102 = vmatprep.mubr.bf16.mxu1 %v4447_v47  ;;  %v1023_v35 = vpop.f32.mrf.mxu0  ;;  %v4110_v47 = vld [vmem:[#allocation8 + $0x888] ss:$16 sps:$4 sm:$0xff]   ;;  %v4166_v25 = vld [vmem:[#allocation8 + $0x96c] ss:$16 sps:$4 sm:$0xff]  }
 0x179   :  { %v1066_v36 = vpop.f32.mrf.mxu1  ;;  %v1065_v37 = vadd.f32 %v1064_v13, %v1022_v34  ;;  %v1024_v38 = vadd.f32 %v1023_v35, %v254_v11  ;;  %3030 = vmatpush1.bf16.msra.mxu0 %v4098_v22  ;;  %v4154_v11 = vld [vmem:[#allocation8 + $0x9ac] ss:$16 sps:$4 sm:$0xff]   ;;  %v4161_v21 = vld [vmem:[#allocation8 + $0xb88] ss:$16 sps:$4 sm:$0xff]  }
 0x17a   :  { %3073 = vmatpush1.bf16.msra.mxu1 %v4101_v23  ;;  %v1025_v41 = vpop.f32.mrf.mxu0  ;;  %3031 = vmatprep.subr.bf16.mxu0 %v4106_v30  ;;  %v4169_v22 = vld [vmem:[#allocation8 + $0xb6c] ss:$16 sps:$4 sm:$0xff]   ;;  %v4164_v23 = vld [vmem:[#allocation8 + $0x968] ss:$16 sps:$4 sm:$0xff]  }
 0x17b   :  { %3074 = vmatprep.subr.bf16.mxu1 %v4109_v31  ;;  %v3590_v44 = vpack.c.bf16 %v1065_v37, %v1063_v33  ;;  %v1026_v27 = vadd.f32 %v1025_v41, %v258_v18  ;;  %v1068_v28 = vpop.f32.mrf.mxu1  ;;  %v1067_v46 = vadd.f32 %v1066_v36, %v1024_v38  ;;  %v4163_v18 = vld [vmem:[#allocation8 + $0xb8c] ss:$16 sps:$4 sm:$0xff]   ;;  %v4167_v24 = vld [vmem:[#allocation8 + $0xb68] ss:$16 sps:$4 sm:$0xff]  }
 0x17c   :  { %v4172_v13 = vld [vmem:[#allocation8 + $0x94c] ss:$16 sps:$4 sm:$0xff]   ;;  %v4170_v31 = vld [vmem:[#allocation8 + $0x948] ss:$16 sps:$4 sm:$0xff]  }
 0x17d   :  { %1096 = vst [vmem:[#allocation10 + $0x8] sm:$0xff] %v3590_v44  ;;  %v1069_v45 = vadd.f32 %v1068_v28, %v1026_v27  ;;  %3032 = vmatpush1.bf16.msra.mxu0 %v4104_v39  ;;  %v4175_v30 = vld [vmem:[#allocation8 + $0xb4c] ss:$16 sps:$4 sm:$0xff]   ;;  %v4173_v33 = vld [vmem:[#allocation8 + $0xb48] ss:$16 sps:$4 sm:$0xff]  }
 0x17e   :  { %3075 = vmatpush1.bf16.msra.mxu1 %v4107_v40  ;;  %3033 = vmatprep.subr.bf16.mxu0 %v4112_v42  ;;  %v4178_v34 = vld [vmem:[#allocation8 + $0x92c] ss:$16 sps:$4 sm:$0xff]   ;;  %v4476_v36 = vld [vmem:[%s4520_s4 + $0x4] sm:$0xff]   ;;  %s4346_s4 = smov [#allocation11]  }
 0x17f   :  { %3076 = vmatprep.subr.bf16.mxu1 %v4115_v43  ;;  %v3592_v51 = vpack.c.bf16 %v1069_v45, %v1067_v46  ;;  %v4181_v35 = vld [vmem:[#allocation8 + $0xb2c] ss:$16 sps:$4 sm:$0xff]   ;;  %v4176_v37 = vld [vmem:[#allocation8 + $0x928] ss:$16 sps:$4 sm:$0xff]   ;;  %v1242_v39 = vunpack.c.l.bf16 %v4476_v36  ;;  %s3158_s25 = sshll.u32 %s4346_s4, 4  ;;  %s3159_s25 = int_to_ptr.vmem [resolvable:$true] %s3158_s25 }
 0x180   :  { %v4179_v38 = vld [vmem:[#allocation8 + $0xb28] ss:$16 sps:$4 sm:$0xff]   ;;  %v4184_v40 = vld [vmem:[#allocation8 + $0x90c] ss:$16 sps:$4 sm:$0xff]   ;;  %s4268_s28 = scalar_lea.vmem %s3159_s25, 512  ;;  %p4273_p7 = scmp.lt.s32.totalorder %s3159_s25, %s3159_s25 }
 0x181   :  { %1098 = vst [vmem:[#allocation10 + $0x18] sm:$0xff] %v3592_v51  ;;  %3034 = vmatpush1.bf16.msra.mxu0 %v4110_v47  ;;  %v4187_v41 = vld [vmem:[#allocation8 + $0xb0c] ss:$16 sps:$4 sm:$0xff]   ;;  %v4182_v42 = vld [vmem:[#allocation8 + $0x908] ss:$16 sps:$4 sm:$0xff]   ;;  %v1247_v44 = vrot.slane %v1242_v39, %v4434_v12  ;;  %v1251_v27 = vrot.slane %v1242_v39, %v4437_v32  ;;  %p4269_p6 = scmp.ne.s32.totalorder %s3159_s25, %s4268_s28  ;;  %p4274_p8 = scmp.lt.s32.totalorder %s4268_s28, %s4268_s28 }
 0x182   :  { %3077 = vmatpush1.bf16.msra.mxu1 %v4113_v48  ;;  %3035 = vmatprep.subr.bf16.mxu0 %v4118_v49  ;;  %v4185_v43 = vld [vmem:[#allocation8 + $0xb08] ss:$16 sps:$4 sm:$0xff]  }
 0x183   :  { %3078 = vmatprep.subr.bf16.mxu1 %v4121_v50  ;;  %v1267_v28 = vrot.slane %v1247_v44, %v4434_v12  ;;  %v1271_v46 = vrot.slane %v1251_v27, %v4434_v12  ;;  %p4275_p9 = por %p4274_p8, %p4273_p7 }
 0x185   :  { %3036 = vmatpush1.bf16.msra.mxu0 %v4116_v52  ;;  %p4276_p10 = pnand %p4275_p9, %p4269_p6 }
 0x186   :  { %3079 = vmatpush1.bf16.msra.mxu1 %v4119_v53  ;;  %3037 = vmatprep.subr.bf16.mxu0 %v4124_v54 }
 0x187   :  { %3080 = vmatprep.subr.bf16.mxu1 %v4127_v55 }
 0x189   :  { %3038 = vmatpush1.bf16.msra.mxu0 %v4122_v56 }
 0x18a   :  { %3081 = vmatpush1.bf16.msra.mxu1 %v4125_v57  ;;  %3039 = vmatprep.subr.bf16.mxu0 %v4130_v58 }
 0x18b   :  { %3082 = vmatprep.subr.bf16.mxu1 %v4133_v26 }
 0x18d   :  { %3040 = vmatpush1.bf16.msra.mxu0 %v4128_v59 }
 0x18e   :  { %3083 = vmatpush1.bf16.msra.mxu1 %v4131_v29  ;;  %3041 = vmatprep.subr.bf16.mxu0 %v4136_v61 }
 0x18f   :  { %3084 = vmatprep.subr.bf16.mxu1 %v4139_v62 }
 0x191   :  { %3042 = vmatpush1.bf16.msra.mxu0 %v4134_v0 }
 0x192   :  { %3085 = vmatpush1.bf16.msra.mxu1 %v4137_v1  ;;  %3043 = vmatprep.subr.bf16.mxu0 %v4142_v2 }
 0x193   :  { %3086 = vmatprep.subr.bf16.mxu1 %v4145_v3 }
 0x195   :  { %3044 = vmatpush2.bf16.msra.mxu0 %v4140_v4 }
 0x196   :  { %3087 = vmatpush2.bf16.msra.mxu1 %v4143_v5  ;;  %3045 = vmatprep.subr.bf16.mxu0 %v4148_v6 }
 0x197   :  { %3088 = vmatprep.subr.bf16.mxu1 %v4151_v7 }
 0x199   :  { %3046 = vmatpush2.bf16.msra.mxu0 %v4146_v8 }
 0x19a   :  { %3089 = vmatpush2.bf16.msra.mxu1 %v4149_v9  ;;  %3047 = vmatprep.subr.bf16.mxu0 %v4154_v11 }
 0x19b   :  { %3090 = vmatprep.subr.bf16.mxu1 %v4157_v14 }
 0x19d   :  { %3048 = vmatpush2.bf16.msra.mxu0 %v4152_v15 }
 0x19e   :  { %3091 = vmatpush2.bf16.msra.mxu1 %v4155_v16  ;;  %3049 = vmatprep.subr.bf16.mxu0 %v4160_v17 }
 0x19f   :  { %3092 = vmatprep.subr.bf16.mxu1 %v4163_v18 }
 0x1a1   :  { %3050 = vmatpush2.bf16.msra.mxu0 %v4158_v19 }
 0x1a2   :  { %3093 = vmatpush2.bf16.msra.mxu1 %v4161_v21  ;;  %3051 = vmatprep.subr.bf16.mxu0 %v4166_v25 }
 0x1a3   :  { %3094 = vmatprep.subr.bf16.mxu1 %v4169_v22 }
 0x1a5   :  { %3052 = vmatpush2.bf16.msra.mxu0 %v4164_v23 }
 0x1a6   :  { %3095 = vmatpush2.bf16.msra.mxu1 %v4167_v24  ;;  %3053 = vmatprep.subr.bf16.mxu0 %v4172_v13 }
 0x1a7   :  { %3096 = vmatprep.subr.bf16.mxu1 %v4175_v30 }
 0x1a9   :  { %3054 = vmatpush2.bf16.msra.mxu0 %v4170_v31 }
 0x1aa   :  { %3097 = vmatpush2.bf16.msra.mxu1 %v4173_v33  ;;  %3055 = vmatprep.subr.bf16.mxu0 %v4178_v34 }
 0x1ab   :  { %3098 = vmatprep.subr.bf16.mxu1 %v4181_v35 }
 0x1ad   :  { %3056 = vmatpush2.bf16.msra.mxu0 %v4176_v37 }
 0x1ae   :  { %3099 = vmatpush2.bf16.msra.mxu1 %v4179_v38  ;;  %3057 = vmatprep.subr.bf16.mxu0 %v4184_v40 }
 0x1af   :  { %3100 = vmatprep.subr.bf16.mxu1 %v4187_v41 }
 0x1b1   :  { %3058 = vmatpush2.bf16.msra.mxu0 %v4182_v42 }
 0x1b2   :  { %3101 = vmatpush2.bf16.msra.mxu1 %v4185_v43 }
 0x1b4   :  { %v1954_v45 = vpop.f32.mrf.mxu0  ;;  %3060 = vmatmul.mubr.bf16.vlgmr.msra.gmra.mxu0 %v4463_v20  ;;  %v1255_v20 = vrot.slane %v1242_v39, %v4454_v60 }
 0x1b5   :  { %v1997_v47 = vpop.f32.mrf.mxu1  ;;  %3103 = vmatmul.mubr.bf16.vlgmr.msra.gmra.mxu1 %v4465_v10  ;;  %v1955_v48 = vadd.f32 %v1954_v45, %v1267_v28  ;;  %v1259_v10 = vrot.slane %v1242_v39, %v4457_v63 }
 0x1b6   :  { %v1956_v49 = vpop.f32.mrf.mxu0  ;;  %v1275_v0 = vrot.slane %v1255_v20, %v4434_v12 }
 0x1b7   :  { %v1999_v50 = vpop.f32.mrf.mxu1  ;;  %v1998_v51 = vadd.f32 %v1997_v47, %v1955_v48  ;;  %v1957_v52 = vadd.f32 %v1956_v49, %v1271_v46  ;;  %v1279_v1 = vrot.slane %v1259_v10, %v4434_v12 }
 0x1b8   :  { %v1958_v53 = vpop.f32.mrf.mxu0 }
 0x1b9   :  { %v2001_v54 = vpop.f32.mrf.mxu1  ;;  %v2000_v55 = vadd.f32 %v1999_v50, %v1957_v52  ;;  %v1959_v56 = vadd.f32 %v1958_v53, %v1267_v28 }
 0x1ba   :  { %v1960_v57 = vpop.f32.mrf.mxu0 }
 0x1bb   :  { %v3593_v58 = vpack.c.bf16 %v2000_v55, %v1998_v51  ;;  %v1961_v26 = vadd.f32 %v1960_v57, %v1271_v46  ;;  %v2003_v59 = vpop.f32.mrf.mxu1  ;;  %v2002_v29 = vadd.f32 %v2001_v54, %v1959_v56 }
 0x1bd   :  { %2116 = vst [vmem:[#allocation11] sm:$0xff] %v3593_v58  ;;  %v2004_v61 = vadd.f32 %v2003_v59, %v1961_v26 }
 0x1bf   :  { %v3595_v62 = vpack.c.bf16 %v2004_v61, %v2002_v29 }
 0x1c1   :  { %2118 = vst [vmem:[#allocation11 + $0x10] sm:$0xff] %v3595_v62 }
 0x1f4   :  { %v2040_v2 = vpop.f32.mrf.mxu0 }
 0x1f5   :  { %v2083_v3 = vpop.f32.mrf.mxu1  ;;  %v2041_v4 = vadd.f32 %v2040_v2, %v1275_v0 }
 0x1f6   :  { %v2042_v5 = vpop.f32.mrf.mxu0 }
 0x1f7   :  { %v2085_v6 = vpop.f32.mrf.mxu1  ;;  %v2084_v7 = vadd.f32 %v2083_v3, %v2041_v4  ;;  %v2043_v8 = vadd.f32 %v2042_v5, %v1279_v1 }
 0x1f8   :  { %v2044_v9 = vpop.f32.mrf.mxu0 }
 0x1f9   :  { %v2087_v11 = vpop.f32.mrf.mxu1  ;;  %v2086_v14 = vadd.f32 %v2085_v6, %v2043_v8  ;;  %v2045_v15 = vadd.f32 %v2044_v9, %v1275_v0 }
 0x1fa   :  { %v2046_v16 = vpop.f32.mrf.mxu0 }
 0x1fb   :  { %v3594_v17 = vpack.c.bf16 %v2086_v14, %v2084_v7  ;;  %v2047_v18 = vadd.f32 %v2046_v16, %v1279_v1  ;;  %v2089_v19 = vpop.f32.mrf.mxu1  ;;  %v2088_v21 = vadd.f32 %v2087_v11, %v2045_v15 }
 0x1fd   :  { %2117 = vst [vmem:[#allocation11 + $0x8] sm:$0xff] %v3594_v17  ;;  %v2090_v25 = vadd.f32 %v2089_v19, %v2047_v18 }
 0x1ff   :  { %v3596_v22 = vpack.c.bf16 %v2090_v25, %v2088_v21 }
 0x201   :  { %2119 = vst [vmem:[#allocation11 + $0x18] sm:$0xff] %v3596_v22 }
 0x202   :  { %4279 = shalt.err (!%p4276_p10)
}
 0x203   :  { %3164 = dma.vmem_to_hbm [thread:$0]  %s3159_s25, 512, %s4522_s6, [#allocation12], %s4344_s0, %s4344_s0, %s4345_s20  }
 0x204   :  { %s4288_s8 = scalar_lea.vmem %s3147_s27, 512  ;;  %p4293_p12 = scmp.lt.s32.totalorder %s3147_s27, %s3147_s27 }
 0x205   :  { %p4289_p11 = scmp.ne.s32.totalorder %s3147_s27, %s4288_s8  ;;  %p4294_p13 = scmp.lt.s32.totalorder %s4288_s8, %s4288_s8 }
 0x207   :  { %p4295_p0 = por %p4294_p13, %p4293_p12 }
 0x209   :  { %p4296_p1 = pnand %p4295_p0, %p4289_p11 }
 0x20b   :  { %4299 = shalt.err (!%p4296_p1)
}
 0x20c   :  { %3152 = dma.vmem_to_hbm [thread:$0]  %s3147_s27, 512, %s4521_s5, [#allocation4], %s4344_s0, %s4344_s0, %s4345_s20   ;;  %v2263_v23 = vunpack.c.h.bf16 %v4476_v36 }
 0x20d   :  { %s4348_s5 = smov [#allocation13]  }
 0x20e   :  { %v2268_v24 = vrot.slane %v2263_v23, %v4434_v12  ;;  %v2272_v13 = vrot.slane %v2263_v23, %v4437_v32  ;;  %v2276_v48 = vrot.slane %v2263_v23, %v4454_v60  ;;  %v2280_v49 = vrot.slane %v2263_v23, %v4457_v63  ;;  %s3170_s6 = sshll.u32 %s4348_s5, 4  ;;  %s3171_s6 = int_to_ptr.vmem [resolvable:$true] %s3170_s6 }
 0x20f   :  { %s4308_s11 = scalar_lea.vmem %s3171_s6, 512  ;;  %p4313_p3 = scmp.lt.s32.totalorder %s3171_s6, %s3171_s6 }
 0x210   :  { %v2288_v30 = vrot.slane %v2268_v24, %v4434_v12  ;;  %v2292_v31 = vrot.slane %v2272_v13, %v4434_v12  ;;  %v2296_v50 = vrot.slane %v2276_v48, %v4434_v12  ;;  %v2300_v51 = vrot.slane %v2280_v49, %v4434_v12  ;;  %p4309_p2 = scmp.ne.s32.totalorder %s3171_s6, %s4308_s11  ;;  %p4314_p4 = scmp.lt.s32.totalorder %s4308_s11, %s4308_s11 }
 0x212   :  { %p4315_p5 = por %p4314_p4, %p4313_p3 }
 0x214   :  { %p4316_p6 = pnand %p4315_p5, %p4309_p2 }
 0x234   :  { %v2975_v33 = vpop.f32.mrf.mxu0 }
 0x235   :  { %v3018_v34 = vpop.f32.mrf.mxu1  ;;  %v2976_v35 = vadd.f32 %v2975_v33, %v2288_v30 }
 0x236   :  { %v2977_v37 = vpop.f32.mrf.mxu0 }
 0x237   :  { %v3020_v38 = vpop.f32.mrf.mxu1  ;;  %v3019_v39 = vadd.f32 %v3018_v34, %v2976_v35  ;;  %v2978_v40 = vadd.f32 %v2977_v37, %v2292_v31 }
 0x238   :  { %v2979_v41 = vpop.f32.mrf.mxu0 }
 0x239   :  { %v3022_v42 = vpop.f32.mrf.mxu1  ;;  %v3021_v43 = vadd.f32 %v3020_v38, %v2978_v40  ;;  %v2980_v44 = vadd.f32 %v2979_v41, %v2288_v30 }
 0x23a   :  { %v2981_v36 = vpop.f32.mrf.mxu0 }
 0x23b   :  { %v3597_v27 = vpack.c.bf16 %v3021_v43, %v3019_v39  ;;  %v2982_v28 = vadd.f32 %v2981_v36, %v2292_v31  ;;  %v3024_v46 = vpop.f32.mrf.mxu1  ;;  %v3023_v32 = vadd.f32 %v3022_v42, %v2980_v44 }
 0x23d   :  { %3137 = vst [vmem:[#allocation13] sm:$0xff] %v3597_v27  ;;  %v3025_v45 = vadd.f32 %v3024_v46, %v2982_v28 }
 0x23f   :  { %v3599_v47 = vpack.c.bf16 %v3025_v45, %v3023_v32 }
 0x241   :  { %3139 = vst [vmem:[#allocation13 + $0x10] sm:$0xff] %v3599_v47 }
 0x274   :  { %v3061_v52 = vpop.f32.mrf.mxu0 }
 0x275   :  { %v3104_v53 = vpop.f32.mrf.mxu1  ;;  %v3062_v54 = vadd.f32 %v3061_v52, %v2296_v50 }
 0x276   :  { %v3063_v55 = vpop.f32.mrf.mxu0 }
 0x277   :  { %v3106_v56 = vpop.f32.mrf.mxu1  ;;  %v3064_v57 = vadd.f32 %v3063_v55, %v2300_v51  ;;  %v3105_v59 = vadd.f32 %v3104_v53, %v3062_v54 }
 0x278   :  { %v3065_v58 = vpop.f32.mrf.mxu0 }
 0x279   :  { %v3108_v26 = vpop.f32.mrf.mxu1  ;;  %v3107_v29 = vadd.f32 %v3106_v56, %v3064_v57  ;;  %v3066_v61 = vadd.f32 %v3065_v58, %v2296_v50 }
 0x27a   :  { %v3067_v62 = vpop.f32.mrf.mxu0 }
 0x27b   :  { %v3598_v20 = vpack.c.bf16 %v3107_v29, %v3105_v59  ;;  %v3068_v60 = vadd.f32 %v3067_v62, %v2300_v51  ;;  %v3110_v10 = vpop.f32.mrf.mxu1  ;;  %v3109_v63 = vadd.f32 %v3108_v26, %v3066_v61 }
 0x27d   :  { %3138 = vst [vmem:[#allocation13 + $0x8] sm:$0xff] %v3598_v20  ;;  %v3111_v12 = vadd.f32 %v3110_v10, %v3068_v60 }
 0x27f   :  { %v3600_v0 = vpack.c.bf16 %v3111_v12, %v3109_v63 }
 0x281   :  { %3140 = vst [vmem:[#allocation13 + $0x18] sm:$0xff] %v3600_v0 }
 0x282   :  { %4319 = shalt.err (!%p4316_p6)
}
 0x283   :  { %3176 = dma.vmem_to_hbm [thread:$0]  %s3171_s6, 512, %s4523_s7, [#allocation12], %s4344_s0, %s4344_s0, %s4345_s20  }
 0x284   :  { %4334 = dma.done.wait [#allocation4], 512  }
 0x285   :  { %4335 = vsyncadd [#allocation4], 4294966784 }
 0x286   :  { %4336 = dma.done.wait [#allocation12], 1024  }
 0x287   :  { %4337 = vsyncadd [#allocation12], 4294966272 }
 0x288   :  { %3186 = vsyncpa [#allocation3], 1 }
 0x289   :  { %3187 = vsyncpa [#allocation6], 1 }
 0x28a   :  { %3188 = vsyncpa [#allocation9], 1 }
 0x28b   :  { %3189 = vsyncpa [#allocation4], 1 }
 0x28c   :  { %3190 = vsyncpa [#allocation12], 1 }

</bundles_post_ra>
